<compile_context>
chip_gen: v7x
topology: tpu7x:2x2x1
jax: 0.10.0
libtpu: 0.0.40
codegen_flags: <defaults>
</compile_context>

<pallas_src>
import jax
import jax.numpy as jnp
import numpy as np
from jax.experimental import pallas as pl
from jax.experimental.pallas import tpu as pltpu

# ----------------------------- model config -----------------------------
X_DIM = 32      # positional-encoding dim of x
DIR_DIM = 16    # positional-encoding dim of view direction
W = 64          # hidden width (PyTorch default is 256; small for the demo)
D = 8           # number of x_linears
SKIPS = (4,)    # skip connection after layer 4
N = 256         # number of sample points


def pick_tile(n):
    """Lane tile (sample points per grid step).

    Single-TC chips (v5e / v6e): one tile covering all n points -> grid=(1,).
    2-TC v7x: two 128-lane tiles so the "parallel" grid axis can shard across
    both TensorCores.  Sweepable via nerf_decoder(..., tn=...).
    """
    tn = n
    try:
        kind = jax.devices()[0].device_kind.lower()
    except Exception:
        kind = ""
    if "v7" in kind and n % 256 == 0:
        tn = 128
    assert tn % 128 == 0 and n % tn == 0
    return tn


# ------------------------------- kernel ---------------------------------
def nerf_decoder_kernel(x_ref, d_ref, w_in_ref, w_hid_ref, wdf_ref, wdd_ref,
                        woh_ref, wod_ref, b_ref, out_ref):
    # In-kernel transposes of the row-major input blocks (one small XLU
    # transpose each); everything downstream is feature-major / lane-dense.
    x = x_ref[...].T          # (X_DIM, TN)
    d = d_ref[...].T          # (DIR_DIM, TN)

    def bias(off, size):
        # Static, sublane-aligned slice of the pre-broadcast bias slab
        # -> (size, TN).  Plain VALU add, no in-kernel lane broadcast.
        return b_ref[off:off + size, :]

    def hid(l, h):
        # packed (W, W) hidden layer l applied to h -> (W, TN), lane-dense
        return jnp.dot(w_hid_ref[l], h, preferred_element_type=jnp.float32)

    def relu(v):
        return jnp.maximum(v, 0.0)

    # ---- x_linears with ReLU, skip after layer 4 ----
    # layer 0: x_dim -> W
    h = relu(jnp.dot(w_in_ref[0], x, preferred_element_type=jnp.float32)
             + bias(0, W))
    # layers 1..4: W -> W
    h = relu(hid(0, h) + bias(1 * W, W))
    h = relu(hid(1, h) + bias(2 * W, W))
    h = relu(hid(2, h) + bias(3 * W, W))
    h = relu(hid(3, h) + bias(4 * W, W))
    # layer 5: input is cat([x, h]) -> exact split matmul (x part + h part)
    h = relu(jnp.dot(w_in_ref[1], x, preferred_element_type=jnp.float32)
             + hid(4, h) + bias(5 * W, W))
    # layers 6..7: W -> W
    h = relu(hid(5, h) + bias(6 * W, W))
    h = relu(hid(6, h) + bias(7 * W, W))

    # ---- feature head (no activation); packed as hidden slot 7 ----
    feature = hid(7, h) + bias(8 * W, W)

    # ---- dir branch: cat([feature, dir]) -> Linear -> ReLU (split matmul) ----
    hd = relu(jnp.dot(wdf_ref[...], feature, preferred_element_type=jnp.float32)
              + jnp.dot(wdd_ref[...], d, preferred_element_type=jnp.float32)
              + bias(9 * W, W // 2))

    # ---- fused output head: row 0 = alpha(h), rows 1..3 = rgb(hd) ----
    # Single lane-dense store of the whole (4, TN) block.
    out = (jnp.dot(woh_ref[...], h, preferred_element_type=jnp.float32)
           + jnp.dot(wod_ref[...], hd, preferred_element_type=jnp.float32)
           + bias(9 * W + W // 2, 4))
    out_ref[...] = out.astype(out_ref.dtype)


# ------------------------------ wrapper ----------------------------------
def nerf_decoder(x, direction, packed, *, tn=None):
    n, x_dim = x.shape
    dir_dim = direction.shape[1]
    w_in, w_hid, wdf, wdd, woh, wod, b = packed
    w = w_hid.shape[1]
    if tn is None:
        tn = pick_tile(n)
    assert n % tn == 0 and tn % 128 == 0
    assert b.shape[1] >= tn and b.shape[1] % tn == 0   # pre-broadcast bias

    def full_spec(a):
        nd = a.ndim
        return pl.BlockSpec(a.shape, lambda i: (0,) * nd)

    in_specs = [
        # row-major input blocks; transposed once inside the kernel
        pl.BlockSpec((tn, x_dim), lambda i: (i, 0)),
        pl.BlockSpec((tn, dir_dim), lambda i: (i, 0)),
        full_spec(w_in), full_spec(w_hid), full_spec(wdf), full_spec(wdd),
        full_spec(woh), full_spec(wod),
        pl.BlockSpec((b.shape[0], tn), lambda i: (0, 0)),
    ]
    out_spec = pl.BlockSpec((4, tn), lambda i: (0, i))

    macs_per_pt = (x_dim * w + 4 * w * w + (w + x_dim) * w + 2 * w * w
                   + w * w + (w + dir_dim) * (w // 2) + 4 * w + 4 * (w // 2))
    weight_elems = sum(int(np.prod(p.shape)) for p in packed)
    cost = pl.CostEstimate(
        flops=2 * n * macs_per_pt,
        transcendentals=0,
        bytes_accessed=4 * (n * (x_dim + dir_dim + 4) + weight_elems),
    )

    outT = pl.pallas_call(
        nerf_decoder_kernel,
        out_shape=jax.ShapeDtypeStruct((4, n), jnp.float32),
        grid=(n // tn,),
        in_specs=in_specs,
        out_specs=out_spec,
        compiler_params=pltpu.CompilerParams(
            dimension_semantics=("parallel",),
        ),
        cost_estimate=cost,
    )(x, direction, w_in, w_hid, wdf, wdd, woh, wod, b)
    # Output stays lane-dense (4, n) inside the kernel; final transpose is
    # left to the (cheap) XLA epilogue.
    return outT.T              # (n, 4) = cat([alpha, rgb], -1)


# -------------------------- params & reference ---------------------------
def init_params(key, lanes=N):
    """Deterministic synthetic weights.

    Returns (packed_kernel_params, ref_dict). ref_dict mirrors PyTorch layout
    (weights as [in, out]); packed params are the feature-major [out, in]
    stacks consumed by the kernel.  Biases are pre-broadcast to `lanes`
    columns so the kernel does plain VALU adds.
    """
    keys = jax.random.split(key, 32)
    ki = iter(range(32))

    def w_init(shape, k):
        fan_in = shape[0]
        return (jax.random.normal(k, shape, jnp.float32) / np.sqrt(fan_in)).astype(
            jnp.float32
        )

    ref = {}
    # x_linears: layer 0 is x_dim->W, layer 5 (right after skip) is (W+x_dim)->W
    for i in range(D):
        if i == 0:
            in_dim = X_DIM
        elif i == 5:
            in_dim = W + X_DIM
        else:
            in_dim = W
        ref[f"xw{i}"] = w_init((in_dim, W), keys[next(ki)])
        ref[f"xb{i}"] = 0.01 * jax.random.normal(keys[next(ki)], (W,), jnp.float32)

    ref["fw"] = w_init((W, W), keys[next(ki)])
    ref["fb"] = 0.01 * jax.random.normal(keys[next(ki)], (W,), jnp.float32)
    ref["aw"] = w_init((W, 1), keys[next(ki)])
    ref["ab"] = 0.01 * jax.random.normal(keys[next(ki)], (1,), jnp.float32)
    ref["dw"] = w_init((W + DIR_DIM, W // 2), keys[next(ki)])
    ref["db"] = 0.01 * jax.random.normal(keys[next(ki)], (W // 2,), jnp.float32)
    ref["rw"] = w_init((W // 2, 3), keys[next(ki)])
    ref["rb"] = 0.01 * jax.random.normal(keys[next(ki)], (3,), jnp.float32)

    # ---- pack into the kernel's feature-major [out, in] form ----
    # layer 0 and the x-part of the skip layer 5:
    w_in = jnp.stack([ref["xw0"].T, ref["xw5"][:X_DIM, :].T])          # (2, W, X_DIM)
    # layers 1-4, h-part of layer 5, layers 6-7, feature_linear:
    w_hid = jnp.stack([ref["xw1"].T, ref["xw2"].T, ref["xw3"].T, ref["xw4"].T,
                       ref["xw5"][X_DIM:, :].T, ref["xw6"].T, ref["xw7"].T,
                       ref["fw"].T])                                   # (8, W, W)
    wdf = ref["dw"][:W, :].T                                           # (W//2, W)
    wdd = ref["dw"][W:, :].T                                           # (W//2, DIR_DIM)
    # fused output head: row 0 = alpha weights, rows 1..3 = rgb weights
    woh = jnp.concatenate([ref["aw"].T, jnp.zeros((3, W), jnp.float32)], axis=0)       # (4, W)
    wod = jnp.concatenate([jnp.zeros((1, W // 2), jnp.float32), ref["rw"].T], axis=0)  # (4, W//2)
    # packed bias column: layers 0..7, feature, dir, [alpha, rgb]
    b_col = jnp.concatenate(
        [ref[f"xb{i}"] for i in range(D)]
        + [ref["fb"], ref["db"], ref["ab"], ref["rb"]]
    ).reshape(-1, 1)                                                   # (612, 1)
    assert b_col.shape == (9 * W + W // 2 + 4, 1)
    # pre-broadcast over the lane axis (host-side, once at pack time)
    b = jnp.asarray(jnp.broadcast_to(b_col, (b_col.shape[0], lanes)))  # (612, lanes)

    packed = (w_in, w_hid, wdf, wdd, woh, wod, b)
    return packed, ref


def ref_forward(x, direction, ref):
    """Pure-JAX mirror of the PyTorch forward (cat-based)."""
    h = x
    for i in range(D):
        h = jnp.maximum(h @ ref[f"xw{i}"] + ref[f"xb{i}"], 0.0)
        if i in SKIPS:
            h = jnp.concatenate([x, h], axis=-1)
    alpha = h @ ref["aw"] + ref["ab"]
    feature = h @ ref["fw"] + ref["fb"]
    hd = jnp.concatenate([feature, direction], axis=-1)
    hd = jnp.maximum(hd @ ref["dw"] + ref["db"], 0.0)
    rgb = hd @ ref["rw"] + ref["rb"]
    return jnp.concatenate([alpha, rgb], axis=-1)


# --------------------------------- main -----------------------------------
if __name__ == "__main__":
    key = jax.random.PRNGKey(0)
    kx, kd, kp = jax.random.split(key, 3)

    x = jax.random.normal(kx, (N, X_DIM), jnp.float32)
    direction = jax.random.normal(kd, (N, DIR_DIM), jnp.float32)

    # Bias packed at the full lane width N so both TN=128 (v7x) and TN=256
    # (v5e/v6e single tile) block shapes read valid broadcast lanes.
    packed, ref = init_params(kp, lanes=N)

    out = jax.block_until_ready(nerf_decoder(x, direction, packed))
    expected = jax.block_until_ready(ref_forward(x, direction, ref))

    np.testing.assert_allclose(np.asarray(out), np.asarray(expected),
                               rtol=5e-3, atol=2e-3)
    assert out.shape == (N, 4) and out.dtype == jnp.float32
    print("KERNEL_OK")
</pallas_src>

<mosaic_0001>
module attributes {stable_mosaic.version = 11 : i64} {
  func.func @nerf_decoder_kernel(%arg0: i32, %arg1: memref<256x32xf32, #tpu.memory_space<vmem>>, %arg2: memref<256x16xf32, #tpu.memory_space<vmem>>, %arg3: memref<2x64x32xf32, #tpu.memory_space<vmem>>, %arg4: memref<8x64x64xf32, #tpu.memory_space<vmem>>, %arg5: memref<32x64xf32, #tpu.memory_space<vmem>>, %arg6: memref<32x16xf32, #tpu.memory_space<vmem>>, %arg7: memref<4x64xf32, #tpu.memory_space<vmem>>, %arg8: memref<4x32xf32, #tpu.memory_space<vmem>>, %arg9: memref<612x256xf32, #tpu.memory_space<vmem>>, %arg10: memref<4x256xf32, #tpu.memory_space<vmem>>) attributes {dimension_semantics = [#tpu.dimension_semantics<parallel>], iteration_bounds = array<i64: 1>, scalar_prefetch = 0 : i64, scratch_operands = 0 : i64, tpu.core_type = #tpu.core_type<tc>, window_params = [{transform_indices = @transform_0, window_bounds = array<i64: 256, 32>}, {transform_indices = @transform_1, window_bounds = array<i64: 256, 16>}, {pipeline_mode = #tpu.pipeline_mode<synchronous>, transform_indices = @transform_2, window_bounds = array<i64: 2, 64, 32>}, {pipeline_mode = #tpu.pipeline_mode<synchronous>, transform_indices = @transform_3, window_bounds = array<i64: 8, 64, 64>}, {pipeline_mode = #tpu.pipeline_mode<synchronous>, transform_indices = @transform_4, window_bounds = array<i64: 32, 64>}, {pipeline_mode = #tpu.pipeline_mode<synchronous>, transform_indices = @transform_5, window_bounds = array<i64: 32, 16>}, {pipeline_mode = #tpu.pipeline_mode<synchronous>, transform_indices = @transform_6, window_bounds = array<i64: 4, 64>}, {pipeline_mode = #tpu.pipeline_mode<synchronous>, transform_indices = @transform_7, window_bounds = array<i64: 4, 32>}, {pipeline_mode = #tpu.pipeline_mode<synchronous>, transform_indices = @transform_8, window_bounds = array<i64: 612, 256>}, {transform_indices = @transform_9, window_bounds = array<i64: 4, 256>}]} {
    %c0 = arith.constant 0 : index
    %c0_0 = arith.constant 0 : index
    %0 = vector.load %arg1[%c0, %c0_0] : memref<256x32xf32, #tpu.memory_space<vmem>>, vector<256x32xf32>
    %1 = tpu.transpose %0, [1, 0] : vector<256x32xf32> -> vector<32x256xf32>
    %c0_1 = arith.constant 0 : index
    %c0_2 = arith.constant 0 : index
    %2 = vector.load %arg2[%c0_1, %c0_2] : memref<256x16xf32, #tpu.memory_space<vmem>>, vector<256x16xf32>
    %3 = tpu.transpose %2, [1, 0] : vector<256x16xf32> -> vector<16x256xf32>
    %c0_3 = arith.constant 0 : index
    %c0_4 = arith.constant 0 : index
    %c0_5 = arith.constant 0 : index
    %4 = vector.load %arg3[%c0_3, %c0_4, %c0_5] : memref<2x64x32xf32, #tpu.memory_space<vmem>>, vector<1x64x32xf32>
    %5 = vector.shape_cast %4 : vector<1x64x32xf32> to vector<64x32xf32>
    %cst = arith.constant dense<0.000000e+00> : vector<64x256xf32>
    %6 = tpu.matmul %5, %1, %cst {dimension_numbers = #tpu.dot_dimension_numbers<[1], [0], [0], [1], [0, 0, 1, 1], [], []>} : vector<64x32xf32>, vector<32x256xf32>, vector<64x256xf32> -> vector<64x256xf32>
    %c0_6 = arith.constant 0 : index
    %c0_7 = arith.constant 0 : index
    %7 = vector.load %arg9[%c0_6, %c0_7] : memref<612x256xf32, #tpu.memory_space<vmem>>, vector<64x256xf32>
    %8 = arith.addf %6, %7 : vector<64x256xf32>
    %cst_8 = arith.constant 0.000000e+00 : f32
    %9 = vector.broadcast %cst_8 : f32 to vector<64x256xf32>
    %10 = arith.maximumf %8, %9 : vector<64x256xf32>
    %c0_9 = arith.constant 0 : index
    %c0_10 = arith.constant 0 : index
    %c0_11 = arith.constant 0 : index
    %11 = vector.load %arg4[%c0_9, %c0_10, %c0_11] : memref<8x64x64xf32, #tpu.memory_space<vmem>>, vector<1x64x64xf32>
    %12 = vector.shape_cast %11 : vector<1x64x64xf32> to vector<64x64xf32>
    %cst_12 = arith.constant dense<0.000000e+00> : vector<64x256xf32>
    %13 = tpu.matmul %12, %10, %cst_12 {dimension_numbers = #tpu.dot_dimension_numbers<[1], [0], [0], [1], [0, 0, 1, 1], [], []>} : vector<64x64xf32>, vector<64x256xf32>, vector<64x256xf32> -> vector<64x256xf32>
    %c64 = arith.constant 64 : index
    %c0_13 = arith.constant 0 : index
    %14 = vector.load %arg9[%c64, %c0_13] : memref<612x256xf32, #tpu.memory_space<vmem>>, vector<64x256xf32>
    %15 = arith.addf %13, %14 : vector<64x256xf32>
    %cst_14 = arith.constant 0.000000e+00 : f32
    %16 = vector.broadcast %cst_14 : f32 to vector<64x256xf32>
    %17 = arith.maximumf %15, %16 : vector<64x256xf32>
    %c1 = arith.constant 1 : index
    %c0_15 = arith.constant 0 : index
    %c0_16 = arith.constant 0 : index
    %18 = vector.load %arg4[%c1, %c0_15, %c0_16] : memref<8x64x64xf32, #tpu.memory_space<vmem>>, vector<1x64x64xf32>
    %19 = vector.shape_cast %18 : vector<1x64x64xf32> to vector<64x64xf32>
    %cst_17 = arith.constant dense<0.000000e+00> : vector<64x256xf32>
    %20 = tpu.matmul %19, %17, %cst_17 {dimension_numbers = #tpu.dot_dimension_numbers<[1], [0], [0], [1], [0, 0, 1, 1], [], []>} : vector<64x64xf32>, vector<64x256xf32>, vector<64x256xf32> -> vector<64x256xf32>
    %c128 = arith.constant 128 : index
    %c0_18 = arith.constant 0 : index
    %21 = vector.load %arg9[%c128, %c0_18] : memref<612x256xf32, #tpu.memory_space<vmem>>, vector<64x256xf32>
    %22 = arith.addf %20, %21 : vector<64x256xf32>
    %cst_19 = arith.constant 0.000000e+00 : f32
    %23 = vector.broadcast %cst_19 : f32 to vector<64x256xf32>
    %24 = arith.maximumf %22, %23 : vector<64x256xf32>
    %c2 = arith.constant 2 : index
    %c0_20 = arith.constant 0 : index
    %c0_21 = arith.constant 0 : index
    %25 = vector.load %arg4[%c2, %c0_20, %c0_21] : memref<8x64x64xf32, #tpu.memory_space<vmem>>, vector<1x64x64xf32>
    %26 = vector.shape_cast %25 : vector<1x64x64xf32> to vector<64x64xf32>
    %cst_22 = arith.constant dense<0.000000e+00> : vector<64x256xf32>
    %27 = tpu.matmul %26, %24, %cst_22 {dimension_numbers = #tpu.dot_dimension_numbers<[1], [0], [0], [1], [0, 0, 1, 1], [], []>} : vector<64x64xf32>, vector<64x256xf32>, vector<64x256xf32> -> vector<64x256xf32>
    %c192 = arith.constant 192 : index
    %c0_23 = arith.constant 0 : index
    %28 = vector.load %arg9[%c192, %c0_23] : memref<612x256xf32, #tpu.memory_space<vmem>>, vector<64x256xf32>
    %29 = arith.addf %27, %28 : vector<64x256xf32>
    %cst_24 = arith.constant 0.000000e+00 : f32
    %30 = vector.broadcast %cst_24 : f32 to vector<64x256xf32>
    %31 = arith.maximumf %29, %30 : vector<64x256xf32>
    %c3 = arith.constant 3 : index
    %c0_25 = arith.constant 0 : index
    %c0_26 = arith.constant 0 : index
    %32 = vector.load %arg4[%c3, %c0_25, %c0_26] : memref<8x64x64xf32, #tpu.memory_space<vmem>>, vector<1x64x64xf32>
    %33 = vector.shape_cast %32 : vector<1x64x64xf32> to vector<64x64xf32>
    %cst_27 = arith.constant dense<0.000000e+00> : vector<64x256xf32>
    %34 = tpu.matmul %33, %31, %cst_27 {dimension_numbers = #tpu.dot_dimension_numbers<[1], [0], [0], [1], [0, 0, 1, 1], [], []>} : vector<64x64xf32>, vector<64x256xf32>, vector<64x256xf32> -> vector<64x256xf32>
    %c256 = arith.constant 256 : index
    %c0_28 = arith.constant 0 : index
    %35 = vector.load %arg9[%c256, %c0_28] : memref<612x256xf32, #tpu.memory_space<vmem>>, vector<64x256xf32>
    %36 = arith.addf %34, %35 : vector<64x256xf32>
    %cst_29 = arith.constant 0.000000e+00 : f32
    %37 = vector.broadcast %cst_29 : f32 to vector<64x256xf32>
    %38 = arith.maximumf %36, %37 : vector<64x256xf32>
    %c1_30 = arith.constant 1 : index
    %c0_31 = arith.constant 0 : index
    %c0_32 = arith.constant 0 : index
    %39 = vector.load %arg3[%c1_30, %c0_31, %c0_32] : memref<2x64x32xf32, #tpu.memory_space<vmem>>, vector<1x64x32xf32>
    %40 = vector.shape_cast %39 : vector<1x64x32xf32> to vector<64x32xf32>
    %cst_33 = arith.constant dense<0.000000e+00> : vector<64x256xf32>
    %41 = tpu.matmul %40, %1, %cst_33 {dimension_numbers = #tpu.dot_dimension_numbers<[1], [0], [0], [1], [0, 0, 1, 1], [], []>} : vector<64x32xf32>, vector<32x256xf32>, vector<64x256xf32> -> vector<64x256xf32>
    %c4 = arith.constant 4 : index
    %c0_34 = arith.constant 0 : index
    %c0_35 = arith.constant 0 : index
    %42 = vector.load %arg4[%c4, %c0_34, %c0_35] : memref<8x64x64xf32, #tpu.memory_space<vmem>>, vector<1x64x64xf32>
    %43 = vector.shape_cast %42 : vector<1x64x64xf32> to vector<64x64xf32>
    %cst_36 = arith.constant dense<0.000000e+00> : vector<64x256xf32>
    %44 = tpu.matmul %43, %38, %cst_36 {dimension_numbers = #tpu.dot_dimension_numbers<[1], [0], [0], [1], [0, 0, 1, 1], [], []>} : vector<64x64xf32>, vector<64x256xf32>, vector<64x256xf32> -> vector<64x256xf32>
    %45 = arith.addf %41, %44 : vector<64x256xf32>
    %c320 = arith.constant 320 : index
    %c0_37 = arith.constant 0 : index
    %46 = vector.load %arg9[%c320, %c0_37] : memref<612x256xf32, #tpu.memory_space<vmem>>, vector<64x256xf32>
    %47 = arith.addf %45, %46 : vector<64x256xf32>
    %cst_38 = arith.constant 0.000000e+00 : f32
    %48 = vector.broadcast %cst_38 : f32 to vector<64x256xf32>
    %49 = arith.maximumf %47, %48 : vector<64x256xf32>
    %c5 = arith.constant 5 : index
    %c0_39 = arith.constant 0 : index
    %c0_40 = arith.constant 0 : index
    %50 = vector.load %arg4[%c5, %c0_39, %c0_40] : memref<8x64x64xf32, #tpu.memory_space<vmem>>, vector<1x64x64xf32>
    %51 = vector.shape_cast %50 : vector<1x64x64xf32> to vector<64x64xf32>
    %cst_41 = arith.constant dense<0.000000e+00> : vector<64x256xf32>
    %52 = tpu.matmul %51, %49, %cst_41 {dimension_numbers = #tpu.dot_dimension_numbers<[1], [0], [0], [1], [0, 0, 1, 1], [], []>} : vector<64x64xf32>, vector<64x256xf32>, vector<64x256xf32> -> vector<64x256xf32>
    %c384 = arith.constant 384 : index
    %c0_42 = arith.constant 0 : index
    %53 = vector.load %arg9[%c384, %c0_42] : memref<612x256xf32, #tpu.memory_space<vmem>>, vector<64x256xf32>
    %54 = arith.addf %52, %53 : vector<64x256xf32>
    %cst_43 = arith.constant 0.000000e+00 : f32
    %55 = vector.broadcast %cst_43 : f32 to vector<64x256xf32>
    %56 = arith.maximumf %54, %55 : vector<64x256xf32>
    %c6 = arith.constant 6 : index
    %c0_44 = arith.constant 0 : index
    %c0_45 = arith.constant 0 : index
    %57 = vector.load %arg4[%c6, %c0_44, %c0_45] : memref<8x64x64xf32, #tpu.memory_space<vmem>>, vector<1x64x64xf32>
    %58 = vector.shape_cast %57 : vector<1x64x64xf32> to vector<64x64xf32>
    %cst_46 = arith.constant dense<0.000000e+00> : vector<64x256xf32>
    %59 = tpu.matmul %58, %56, %cst_46 {dimension_numbers = #tpu.dot_dimension_numbers<[1], [0], [0], [1], [0, 0, 1, 1], [], []>} : vector<64x64xf32>, vector<64x256xf32>, vector<64x256xf32> -> vector<64x256xf32>
    %c448 = arith.constant 448 : index
    %c0_47 = arith.constant 0 : index
    %60 = vector.load %arg9[%c448, %c0_47] : memref<612x256xf32, #tpu.memory_space<vmem>>, vector<64x256xf32>
    %61 = arith.addf %59, %60 : vector<64x256xf32>
    %cst_48 = arith.constant 0.000000e+00 : f32
    %62 = vector.broadcast %cst_48 : f32 to vector<64x256xf32>
    %63 = arith.maximumf %61, %62 : vector<64x256xf32>
    %c7 = arith.constant 7 : index
    %c0_49 = arith.constant 0 : index
    %c0_50 = arith.constant 0 : index
    %64 = vector.load %arg4[%c7, %c0_49, %c0_50] : memref<8x64x64xf32, #tpu.memory_space<vmem>>, vector<1x64x64xf32>
    %65 = vector.shape_cast %64 : vector<1x64x64xf32> to vector<64x64xf32>
    %cst_51 = arith.constant dense<0.000000e+00> : vector<64x256xf32>
    %66 = tpu.matmul %65, %63, %cst_51 {dimension_numbers = #tpu.dot_dimension_numbers<[1], [0], [0], [1], [0, 0, 1, 1], [], []>} : vector<64x64xf32>, vector<64x256xf32>, vector<64x256xf32> -> vector<64x256xf32>
    %c512 = arith.constant 512 : index
    %c0_52 = arith.constant 0 : index
    %67 = vector.load %arg9[%c512, %c0_52] : memref<612x256xf32, #tpu.memory_space<vmem>>, vector<64x256xf32>
    %68 = arith.addf %66, %67 : vector<64x256xf32>
    %c0_53 = arith.constant 0 : index
    %c0_54 = arith.constant 0 : index
    %69 = vector.load %arg5[%c0_53, %c0_54] : memref<32x64xf32, #tpu.memory_space<vmem>>, vector<32x64xf32>
    %cst_55 = arith.constant dense<0.000000e+00> : vector<32x256xf32>
    %70 = tpu.matmul %69, %68, %cst_55 {dimension_numbers = #tpu.dot_dimension_numbers<[1], [0], [0], [1], [0, 0, 1, 1], [], []>} : vector<32x64xf32>, vector<64x256xf32>, vector<32x256xf32> -> vector<32x256xf32>
    %c0_56 = arith.constant 0 : index
    %c0_57 = arith.constant 0 : index
    %71 = vector.load %arg6[%c0_56, %c0_57] : memref<32x16xf32, #tpu.memory_space<vmem>>, vector<32x16xf32>
    %cst_58 = arith.constant dense<0.000000e+00> : vector<32x256xf32>
    %72 = tpu.matmul %71, %3, %cst_58 {dimension_numbers = #tpu.dot_dimension_numbers<[1], [0], [0], [1], [0, 0, 1, 1], [], []>} : vector<32x16xf32>, vector<16x256xf32>, vector<32x256xf32> -> vector<32x256xf32>
    %73 = arith.addf %70, %72 : vector<32x256xf32>
    %c576 = arith.constant 576 : index
    %c0_59 = arith.constant 0 : index
    %74 = vector.load %arg9[%c576, %c0_59] : memref<612x256xf32, #tpu.memory_space<vmem>>, vector<32x256xf32>
    %75 = arith.addf %73, %74 : vector<32x256xf32>
    %cst_60 = arith.constant 0.000000e+00 : f32
    %76 = vector.broadcast %cst_60 : f32 to vector<32x256xf32>
    %77 = arith.maximumf %75, %76 : vector<32x256xf32>
    %c0_61 = arith.constant 0 : index
    %c0_62 = arith.constant 0 : index
    %78 = vector.load %arg7[%c0_61, %c0_62] : memref<4x64xf32, #tpu.memory_space<vmem>>, vector<4x64xf32>
    %cst_63 = arith.constant dense<0.000000e+00> : vector<4x256xf32>
    %79 = tpu.matmul %78, %63, %cst_63 {dimension_numbers = #tpu.dot_dimension_numbers<[1], [0], [0], [1], [0, 0, 1, 1], [], []>} : vector<4x64xf32>, vector<64x256xf32>, vector<4x256xf32> -> vector<4x256xf32>
    %c0_64 = arith.constant 0 : index
    %c0_65 = arith.constant 0 : index
    %80 = vector.load %arg8[%c0_64, %c0_65] : memref<4x32xf32, #tpu.memory_space<vmem>>, vector<4x32xf32>
    %cst_66 = arith.constant dense<0.000000e+00> : vector<4x256xf32>
    %81 = tpu.matmul %80, %77, %cst_66 {dimension_numbers = #tpu.dot_dimension_numbers<[1], [0], [0], [1], [0, 0, 1, 1], [], []>} : vector<4x32xf32>, vector<32x256xf32>, vector<4x256xf32> -> vector<4x256xf32>
    %82 = arith.addf %79, %81 : vector<4x256xf32>
    %c608 = arith.constant 608 : index
    %c0_67 = arith.constant 0 : index
    %83 = vector.load %arg9[%c608, %c0_67] : memref<612x256xf32, #tpu.memory_space<vmem>>, vector<4x256xf32>
    %84 = arith.addf %82, %83 : vector<4x256xf32>
    %c0_68 = arith.constant 0 : index
    %c0_69 = arith.constant 0 : index
    %85 = vector.load %arg10[%c0_68, %c0_69] : memref<4x256xf32, #tpu.memory_space<vmem>>, vector<4x256xf32>
    tpu.vector_store %arg10[%c0_68, %c0_69], %84 {strides = array<i32>} : memref<4x256xf32, #tpu.memory_space<vmem>>, vector<4x256xf32>,
    return
  }
  func.func @transform_0(%arg0: i32) -> (i32, i32) {
    %c0_i32 = arith.constant 0 : i32
    %c0_i32_0 = arith.constant 0 : i32
    return %arg0, %c0_i32 : i32, i32
  }
  func.func @transform_1(%arg0: i32) -> (i32, i32) {
    %c0_i32 = arith.constant 0 : i32
    %c0_i32_0 = arith.constant 0 : i32
    return %arg0, %c0_i32 : i32, i32
  }
  func.func @transform_2(%arg0: i32) -> (i32, i32, i32) {
    %c0_i32 = arith.constant 0 : i32
    %c0_i32_0 = arith.constant 0 : i32
    %c0_i32_1 = arith.constant 0 : i32
    %c0_i32_2 = arith.constant 0 : i32
    return %c0_i32, %c0_i32_0, %c0_i32_1 : i32, i32, i32
  }
  func.func @transform_3(%arg0: i32) -> (i32, i32, i32) {
    %c0_i32 = arith.constant 0 : i32
    %c0_i32_0 = arith.constant 0 : i32
    %c0_i32_1 = arith.constant 0 : i32
    %c0_i32_2 = arith.constant 0 : i32
    return %c0_i32, %c0_i32_0, %c0_i32_1 : i32, i32, i32
  }
  func.func @transform_4(%arg0: i32) -> (i32, i32) {
    %c0_i32 = arith.constant 0 : i32
    %c0_i32_0 = arith.constant 0 : i32
    %c0_i32_1 = arith.constant 0 : i32
    return %c0_i32, %c0_i32_0 : i32, i32
  }
  func.func @transform_5(%arg0: i32) -> (i32, i32) {
    %c0_i32 = arith.constant 0 : i32
    %c0_i32_0 = arith.constant 0 : i32
    %c0_i32_1 = arith.constant 0 : i32
    return %c0_i32, %c0_i32_0 : i32, i32
  }
  func.func @transform_6(%arg0: i32) -> (i32, i32) {
    %c0_i32 = arith.constant 0 : i32
    %c0_i32_0 = arith.constant 0 : i32
    %c0_i32_1 = arith.constant 0 : i32
    return %c0_i32, %c0_i32_0 : i32, i32
  }
  func.func @transform_7(%arg0: i32) -> (i32, i32) {
    %c0_i32 = arith.constant 0 : i32
    %c0_i32_0 = arith.constant 0 : i32
    %c0_i32_1 = arith.constant 0 : i32
    return %c0_i32, %c0_i32_0 : i32, i32
  }
  func.func @transform_8(%arg0: i32) -> (i32, i32) {
    %c0_i32 = arith.constant 0 : i32
    %c0_i32_0 = arith.constant 0 : i32
    %c0_i32_1 = arith.constant 0 : i32
    return %c0_i32, %c0_i32_0 : i32, i32
  }
  func.func @transform_9(%arg0: i32) -> (i32, i32) {
    %c0_i32 = arith.constant 0 : i32
    %c0_i32_0 = arith.constant 0 : i32
    return %c0_i32, %arg0 : i32, i32
  }
}

</mosaic_0001>

<bundles_post_ra>
// kernel: tpu_custom_call.1
= control target key start
LH: loop header
LB: loop body
LE: loop exit
PB: predicated region body
PF: predicated region fallthrough
CT: control target
= control target key end

     0   :  { %14 = vsyncpa [#allocation3], 0  ;;  %s4170_s0 = inlined_call_operand.vmem [shape: f32[256,32], index: 0, kind: input, shape index: {}]   ;;  %s4171_s1 = inlined_call_operand.vmem [shape: f32[256,16], index: 1, kind: input, shape index: {}]   ;;  %s4172_s2 = inlined_call_operand.vmem [shape: f32[2,64,32], index: 2, kind: input, shape index: {}]   ;;  %s4173_s3 = inlined_call_operand.vmem [shape: f32[8,64,64], index: 3, kind: input, shape index: {}]   ;;  %s4174_s4 = inlined_call_operand.vmem [shape: f32[32,64], index: 4, kind: input, shape index: {}]   ;;  %s4175_s5 = inlined_call_operand.vmem [shape: f32[32,16], index: 5, kind: input, shape index: {}]   ;;  %s4176_s6 = inlined_call_operand.vmem [shape: f32[4,64], index: 6, kind: input, shape index: {}]   ;;  %s4177_s7 = inlined_call_operand.vmem [shape: f32[4,32], index: 7, kind: input, shape index: {}]   ;;  %s4178_s8 = inlined_call_operand.hbm [shape: f32[612,256], index: 8, kind: input, shape index: {}]   ;;  %s4179_s9 = inlined_call_operand.hbm [shape: f32[4,256], index: 9, kind: output, shape index: {}]  }
   0x1   :  { %15 = vsyncpa [#allocation4], 0  ;;  %s3245_s30 = smov [#allocation2]   ;;  %s3197_s13 = scalar_lea.hbm %s4178_s8, 19712 }
   0x2   :  { %s37_s10 = sshll.u32 %s3245_s30, 4  ;;  %p3198_p0 = scmp.ne.s32.totalorder %s4178_s8, %s3197_s13  ;;  %s38_s10 = int_to_ptr.vmem [resolvable:$true] %s37_s10 }
   0x3   :  { %p3201_p1 = scmp.lt.u32.totalorder %s3197_s13, %s4178_s8 }
   0x5   :  { %p3203_p2 = pnand %p3201_p1, %p3198_p0 }
   0x7   :  { %3206 = shalt.err (!%p3203_p2)
}
   0x8   :  { %s3207_s18 = scalar_lea.vmem %s38_s10, 19712  ;;  %p3212_p4 = scmp.lt.s32.totalorder %s38_s10, %s38_s10 }
   0x9   :  { %p3208_p3 = scmp.ne.s32.totalorder %s38_s10, %s3207_s18  ;;  %p3213_p5 = scmp.lt.s32.totalorder %s3207_s18, %s3207_s18 }
   0xb   :  { %p3214_p6 = por %p3213_p5, %p3212_p4 }
   0xd   :  { %p3215_p7 = pnand %p3214_p6, %p3208_p3 }
   0xf   :  { %3218 = shalt.err (!%p3215_p7)
}
  0x10   :  { %s3246_s19 = smov 256   ;;  %s3247_s20 = smov 16  }
  0x11   :  { %43 = dma.hbm_to_vmem [thread:$0]  %s4178_s8, 19712, %s38_s10, [#allocation3], %s3246_s19, %s3246_s19, %s3247_s20  }
  0x12   :  { %3241 = dma.done.wait [#allocation3], 19712  }
  0x13   :  { %3242 = vsyncadd [#allocation3], 4294947584  ;;  %vm135_vm0 = vcmask 261120   ;;  %v63_v1 = vld [vmem:[%s4170_s0 + $0x80] sm:$0xff]  ;;  %v64_v2 = vld [vmem:[%s4170_s0 + $0x88] sm:$0xff]  ;;  %v3248_v57 = vmov 0.0  }
  0x14   :  { %vm3314_vm1 = vmpackc.low %vm135_vm0, %vm135_vm0  ;;  %v47_v3 = vld [vmem:[%s4170_s0] sm:$0xff]  ;;  %v3327_v4 = vpack.c.bf16 %v64_v2, %v63_v1  ;;  %v48_v5 = vld [vmem:[%s4170_s0 + $0x8] sm:$0xff]  ;;  %522 = vmatprep.mubr.f32.mxu1 %v3248_v57  ;;  %vm409_vm2 = vcmask 523264   ;;  %vm1963_vm3 = vcmask 130048   ;;  %s3249_s24 = smov [#allocation5]  }
  0x15   :  { %v65_v6 = vld [vmem:[%s4170_s0 + $0x90] sm:$0xff]  ;;  %v66_v7 = vld [vmem:[%s4170_s0 + $0x98] sm:$0xff]  ;;  %v3338_v8 = vpack.c.bf16 %v48_v5, %v47_v3  ;;  %v67_v12 = vld [vmem:[%s4170_s0 + $0xa0] sm:$0xff]  ;;  %s2451_s25 = sshll.u32 %s3249_s24, 4  ;;  %s2452_s25 = int_to_ptr.vmem [resolvable:$true] %s2451_s25 }
  0x16   :  { %v3340_v9 = vpack.c.bf16 %v66_v7, %v65_v6  ;;  %2848 = vmatprep.subr.msk.bf16.mxu0 %vm3314_vm1, %v3327_v4  ;;  %v49_v10 = vld [vmem:[%s4170_s0 + $0x10] sm:$0xff]  ;;  %v50_v11 = vld [vmem:[%s4170_s0 + $0x18] sm:$0xff]  ;;  %v68_v13 = vld [vmem:[%s4170_s0 + $0xa8] sm:$0xff]  ;;  %s3219_s26 = scalar_lea.vmem %s2452_s25, 128  ;;  %p3224_p9 = scmp.lt.s32.totalorder %s2452_s25, %s2452_s25 }
  0x17   :  { %2851 = vmatpush3.bf16.xpose.msk.msra.mxu0 %vm3314_vm1, %v3338_v8  ;;  %v3363_v14 = vpack.c.bf16 %v50_v11, %v49_v10  ;;  %v3365_v15 = vpack.c.bf16 %v68_v13, %v67_v12  ;;  %v111_v16 = vld [vmem:[%s4172_s2] sm:$0xff]  ;;  %v52_v18 = vld [vmem:[%s4170_s0 + $0x28] sm:$0xff]  ;;  %v69_v19 = vld [vmem:[%s4170_s0 + $0xb0] sm:$0xff]  ;;  %p3220_p8 = scmp.ne.s32.totalorder %s2452_s25, %s3219_s26  ;;  %p3225_p10 = scmp.lt.s32.totalorder %s3219_s26, %s3219_s26 }
  0x18   :  { %2854 = vmatprep.subr.msk.bf16.mxu0 %vm3314_vm1, %v3340_v9  ;;  %2742 = vmatprep.mubr.msk.f32.mxu0 %vm135_vm0, %v111_v16  ;;  %v51_v17 = vld [vmem:[%s4170_s0 + $0x20] sm:$0xff]  ;;  %v70_v20 = vld [vmem:[%s4170_s0 + $0xb8] sm:$0xff]  ;;  %v53_v23 = vld [vmem:[%s4170_s0 + $0x30] sm:$0xff] }
  0x19   :  { %v3389_v21 = vpack.c.bf16 %v52_v18, %v51_v17  ;;  %v3391_v22 = vpack.c.bf16 %v70_v20, %v69_v19  ;;  %v54_v24 = vld [vmem:[%s4170_s0 + $0x38] sm:$0xff]  ;;  %v71_v25 = vld [vmem:[%s4170_s0 + $0xc0] sm:$0xff]  ;;  %v72_v26 = vld [vmem:[%s4170_s0 + $0xc8] sm:$0xff]  ;;  %p3226_p11 = por %p3225_p10, %p3224_p9 }
  0x1a   :  { %v3411_v27 = vpack.c.bf16 %v54_v24, %v53_v23  ;;  %v3413_v28 = vpack.c.bf16 %v72_v26, %v71_v25  ;;  %v55_v29 = vld [vmem:[%s4170_s0 + $0x40] sm:$0xff]  ;;  %v56_v30 = vld [vmem:[%s4170_s0 + $0x48] sm:$0xff]  ;;  %v73_v31 = vld [vmem:[%s4170_s0 + $0xd0] sm:$0xff] }
  0x1b   :  { %v74_v32 = vld [vmem:[%s4170_s0 + $0xd8] sm:$0xff]  ;;  %v3433_v33 = vpack.c.bf16 %v56_v30, %v55_v29  ;;  %v57_v35 = vld [vmem:[%s4170_s0 + $0x50] sm:$0xff]  ;;  %v75_v37 = vld [vmem:[%s4170_s0 + $0xe0] sm:$0xff]  ;;  %p3227_p12 = pnand %p3226_p11, %p3220_p8 }
  0x1c   :  { %v3435_v34 = vpack.c.bf16 %v74_v32, %v73_v31  ;;  %v58_v36 = vld [vmem:[%s4170_s0 + $0x58] sm:$0xff]  ;;  %v76_v38 = vld [vmem:[%s4170_s0 + $0xe8] sm:$0xff]  ;;  %v59_v41 = vld [vmem:[%s4170_s0 + $0x60] sm:$0xff] }
  0x1d   :  { %v3455_v39 = vpack.c.bf16 %v58_v36, %v57_v35  ;;  %v3457_v40 = vpack.c.bf16 %v76_v38, %v75_v37  ;;  %v60_v42 = vld [vmem:[%s4170_s0 + $0x68] sm:$0xff]  ;;  %v77_v43 = vld [vmem:[%s4170_s0 + $0xf0] sm:$0xff]  ;;  %v78_v44 = vld [vmem:[%s4170_s0 + $0xf8] sm:$0xff] }
  0x1e   :  { %v3477_v45 = vpack.c.bf16 %v60_v42, %v59_v41  ;;  %v3479_v46 = vpack.c.bf16 %v78_v44, %v77_v43  ;;  %v61_v47 = vld [vmem:[%s4170_s0 + $0x70] sm:$0xff]  ;;  %v62_v48 = vld [vmem:[%s4170_s0 + $0x78] sm:$0xff]  ;;  %v112_v50 = vld [vmem:[%s4172_s2 + $0x8] sm:$0xff] }
  0x1f   :  { %2857 = vmatpush3.bf16.xpose.msk.msra.mxu0 %vm3314_vm1, %v3363_v14  ;;  %v3493_v49 = vpack.c.bf16 %v62_v48, %v61_v47  ;;  %v113_v51 = vld [vmem:[%s4172_s2 + $0x10] sm:$0xff]  ;;  %v114_v52 = vld [vmem:[%s4172_s2 + $0x18] sm:$0xff]  ;;  %v115_v53 = vld [vmem:[%s4172_s2 + $0x20] sm:$0xff] }
  0x20   :  { %2860 = vmatprep.subr.msk.bf16.mxu0 %vm3314_vm1, %v3365_v15  ;;  %v116_v54 = vld [vmem:[%s4172_s2 + $0x28] sm:$0xff]  ;;  %v117_v55 = vld [vmem:[%s4172_s2 + $0x30] sm:$0xff]  ;;  %v118_v56 = vld [vmem:[%s4172_s2 + $0x38] sm:$0xff] }
  0x21   :  { %v119_v58 = vld [vmem:[#allocation2] sm:$0xff]  ;;  %v120_v60 = vld [vmem:[#allocation2 + $0x8] sm:$0xff]  ;;  %v121_v62 = vld [vmem:[#allocation2 + $0x10] sm:$0xff] }
  0x22   :  { %v122_v1 = vld [vmem:[#allocation2 + $0x18] sm:$0xff]  ;;  %v124_v19 = vld [vmem:[#allocation2 + $0x28] sm:$0xff]  ;;  %v125_v24 = vld [vmem:[#allocation2 + $0x30] sm:$0xff] }
  0x23   :  { %v126_v26 = vld [vmem:[#allocation2 + $0x38] sm:$0xff]  ;;  %v127_v42 = vld [vmem:[#allocation2 + $0x40] sm:$0xff]  ;;  %v128_v47 = vld [vmem:[#allocation2 + $0x48] sm:$0xff] }
  0x24   :  { %v2559_v0 = vld [vmem:[%s4172_s2 + $0x58] sm:$0xff]  ;;  %vm3914_vm4 = vmpackc.low %vm1963_vm3, %vm1963_vm3 }
  0x27   :  { %2863 = vmatpush3.bf16.xpose.msk.msra.mxu0 %vm3314_vm1, %v3389_v21 }
  0x28   :  { %2866 = vmatprep.subr.msk.bf16.mxu0 %vm3314_vm1, %v3391_v22 }
  0x2f   :  { %2869 = vmatpush3.bf16.xpose.msk.msra.mxu0 %vm3314_vm1, %v3411_v27 }
  0x30   :  { %2872 = vmatprep.subr.msk.bf16.mxu0 %vm3314_vm1, %v3413_v28 }
  0x37   :  { %2875 = vmatpush3.bf16.xpose.msk.msra.mxu0 %vm3314_vm1, %v3433_v33 }
  0x38   :  { %2878 = vmatprep.subr.msk.bf16.mxu0 %vm3314_vm1, %v3435_v34 }
  0x3f   :  { %2881 = vmatpush3.bf16.xpose.msk.msra.mxu0 %vm3314_vm1, %v3455_v39 }
  0x40   :  { %2884 = vmatprep.subr.msk.bf16.mxu0 %vm3314_vm1, %v3457_v40 }
  0x47   :  { %2887 = vmatpush3.bf16.xpose.msk.msra.mxu0 %vm3314_vm1, %v3477_v45 }
  0x48   :  { %2890 = vmatprep.subr.msk.bf16.mxu0 %vm3314_vm1, %v3479_v46 }
  0x4f   :  { %2893 = vmatpush3.bf16.xpose.msk.msra.mxu0 %vm3314_vm1, %v3493_v49 }
  0x56   :  { %2743 = vmatmul.mubr.msk.f32.vlgmr.msra.gmra.mrb[0].mxu0 %vm135_vm0, %v111_v16  ;;  %v123_v16 = vld [vmem:[#allocation2 + $0x20] sm:$0xff] }
  0x57   :  { %2744 = vmatprep.mubr.msk.f32.mxu0 %vm135_vm0, %v112_v50 }
  0x5a   :  { %2745 = vmatmul.mubr.msk.f32.gmra.mrb[2].mxu0 %vm135_vm0, %v112_v50 }
  0x5b   :  { %2746 = vmatprep.mubr.msk.f32.mxu0 %vm135_vm0, %v113_v51 }
  0x5e   :  { %2747 = vmatmul.mubr.msk.f32.gmra.mrb[4].mxu0 %vm135_vm0, %v113_v51  ;;  %v129_v51 = vld [vmem:[#allocation2 + $0x50] sm:$0xff] }
  0x5f   :  { %2748 = vmatprep.mubr.msk.f32.mxu0 %vm135_vm0, %v114_v52 }
  0x62   :  { %2749 = vmatmul.mubr.msk.f32.gmra.mrb[6].mxu0 %vm135_vm0, %v114_v52 }
  0x63   :  { %2750 = vmatprep.mubr.msk.f32.mxu0 %vm135_vm0, %v115_v53 }
  0x66   :  { %2751 = vmatmul.mubr.msk.f32.gmra.mrb[8].mxu0 %vm135_vm0, %v115_v53  ;;  %v130_v53 = vld [vmem:[#allocation2 + $0x58] sm:$0xff] }
  0x67   :  { %2752 = vmatprep.mubr.msk.f32.mxu0 %vm135_vm0, %v116_v54 }
  0x6a   :  { %2753 = vmatmul.mubr.msk.f32.gmra.mrb[10].mxu0 %vm135_vm0, %v116_v54 }
  0x6b   :  { %2754 = vmatprep.mubr.msk.f32.mxu0 %vm135_vm0, %v117_v55 }
  0x6e   :  { %2755 = vmatmul.mubr.msk.f32.gmra.mrb[12].mxu0 %vm135_vm0, %v117_v55 }
  0x6f   :  { %2756 = vmatprep.mubr.msk.f32.mxu0 %vm135_vm0, %v118_v56 }
  0x72   :  { %2757 = vmatmul.mubr.msk.f32.gmra.mrb[14].mxu0 %vm135_vm0, %v118_v56 }
  0x73   :  { %498 = vmatprep.mubr.f32.mxu0 %v3248_v57 }
 0x129   :  { %v322_v59 = vpop.f32.mrb[0].mxu0 }
 0x12a   :  { %v324_v61 = vpop.f32.mrb[1].mxu0  ;;  %v323_v63 = vadd.f32 %v322_v59, %v119_v58 }
 0x12b   :  { %v325_v2 = vadd.f32 %v324_v61, %v120_v60 }
 0x12c   :  { %v369_v10 = vmax.f32 %v323_v63, 0.0 }
 0x12d   :  { %v328_v3 = vpop.f32.mrb[2].mxu0  ;;  %v370_v12 = vmax.f32 %v325_v2, 0.0 }
 0x12e   :  { %v329_v5 = vadd.f32 %v328_v3, %v121_v62  ;;  %v330_v6 = vpop.f32.mrb[3].mxu0 }
 0x12f   :  { %v331_v7 = vadd.f32 %v330_v6, %v122_v1  ;;  %v131_v1 = vld [vmem:[#allocation2 + $0x60] sm:$0xff] }
 0x130   :  { %v371_v11 = vmax.f32 %v329_v5, 0.0  ;;  %v132_v5 = vld [vmem:[#allocation2 + $0x68] sm:$0xff] }
 0x131   :  { %v372_v13 = vmax.f32 %v331_v7, 0.0  ;;  %v334_v17 = vpop.f32.mrb[4].mxu0 }
 0x132   :  { %v2896_v18 = vpack.c.bf16 %v371_v11, %v369_v10  ;;  %v336_v20 = vpop.f32.mrb[5].mxu0  ;;  %v335_v25 = vadd.f32 %v334_v17, %v123_v16  ;;  %v133_v10 = vld [vmem:[#allocation2 + $0x70] sm:$0xff] }
 0x133   :  { %v2894_v23 = vpack.c.bf16 %v372_v13, %v370_v12  ;;  %v337_v29 = vadd.f32 %v336_v20, %v124_v19  ;;  %v134_v12 = vld [vmem:[#allocation2 + $0x78] sm:$0xff] }
 0x134   :  { %v373_v36 = vmax.f32 %v335_v25, 0.0 }
 0x135   :  { %v340_v30 = vpop.f32.mrb[6].mxu0  ;;  %2895 = vmatprep.subr.bf16.mxu0 %v2894_v23  ;;  %3158 = vmatprep.subr.bf16.mxu1 %v2894_v23  ;;  %v374_v38 = vmax.f32 %v337_v29, 0.0 }
 0x136   :  { %v341_v31 = vadd.f32 %v340_v30, %v125_v24  ;;  %v342_v32 = vpop.f32.mrb[7].mxu0  ;;  %2897 = vmatpush1.bf16.msra.mxu0 %v2896_v18  ;;  %3162 = vmatpush1.bf16.msra.mxu1 %v2896_v18  ;;  %v385_v30 = vld [vmem:[%s4173_s3] sm:$0xff] }
 0x137   :  { %v343_v35 = vadd.f32 %v342_v32, %v126_v26  ;;  %v386_v32 = vld [vmem:[%s4173_s3 + $0x8] sm:$0xff] }
 0x138   :  { %v375_v37 = vmax.f32 %v341_v31, 0.0  ;;  %v389_v31 = vld [vmem:[%s4173_s3 + $0x20] sm:$0xff] }
 0x139   :  { %v376_v41 = vmax.f32 %v343_v35, 0.0  ;;  %v346_v43 = vpop.f32.mrb[8].mxu0  ;;  %v390_v35 = vld [vmem:[%s4173_s3 + $0x28] sm:$0xff] }
 0x13a   :  { %v2900_v44 = vpack.c.bf16 %v375_v37, %v373_v36  ;;  %v348_v48 = vpop.f32.mrb[9].mxu0  ;;  %v347_v52 = vadd.f32 %v346_v43, %v127_v42  ;;  %v387_v36 = vld [vmem:[%s4173_s3 + $0x10] sm:$0xff]  ;;  %v401_v42 = vld [vmem:[#allocation2 + $0xc0] sm:$0xff]  ;;  %v402_v43 = vld [vmem:[#allocation2 + $0xc8] sm:$0xff] }
 0x13b   :  { %v2898_v50 = vpack.c.bf16 %v376_v41, %v374_v38  ;;  %v349_v54 = vadd.f32 %v348_v48, %v128_v47  ;;  %v391_v37 = vld [vmem:[%s4173_s3 + $0x30] sm:$0xff]  ;;  %v388_v38 = vld [vmem:[%s4173_s3 + $0x18] sm:$0xff] }
 0x13c   :  { %v377_v60 = vmax.f32 %v347_v52, 0.0  ;;  %v392_v41 = vld [vmem:[%s4173_s3 + $0x38] sm:$0xff] }
 0x13d   :  { %v352_v55 = vpop.f32.mrb[10].mxu0  ;;  %2899 = vmatprep.subr.bf16.mxu0 %v2898_v50  ;;  %3159 = vmatprep.subr.bf16.mxu1 %v2898_v50  ;;  %v378_v62 = vmax.f32 %v349_v54, 0.0  ;;  %v394_v50 = vld [vmem:[#allocation2 + $0x88] sm:$0xff]  ;;  %v395_v54 = vld [vmem:[#allocation2 + $0x90] sm:$0xff] }
 0x13e   :  { %v353_v56 = vadd.f32 %v352_v55, %v129_v51  ;;  %v354_v58 = vpop.f32.mrb[11].mxu0  ;;  %2901 = vmatpush1.bf16.msra.mxu0 %v2900_v44  ;;  %3163 = vmatpush1.bf16.msra.mxu1 %v2900_v44  ;;  %v393_v44 = vld [vmem:[#allocation2 + $0x80] sm:$0xff] }
 0x13f   :  { %v355_v59 = vadd.f32 %v354_v58, %v130_v53 }
 0x140   :  { %v379_v61 = vmax.f32 %v353_v56, 0.0  ;;  %v403_v56 = vld [vmem:[#allocation2 + $0xd0] sm:$0xff] }
 0x141   :  { %v380_v63 = vmax.f32 %v355_v59, 0.0  ;;  %v358_v2 = vpop.f32.mrb[12].mxu0  ;;  %v396_v59 = vld [vmem:[#allocation2 + $0x98] sm:$0xff] }
 0x142   :  { %v2904_v3 = vpack.c.bf16 %v379_v61, %v377_v60  ;;  %v360_v6 = vpop.f32.mrb[13].mxu0  ;;  %v359_v11 = vadd.f32 %v358_v2, %v131_v1  ;;  %v404_v60 = vld [vmem:[#allocation2 + $0xd8] sm:$0xff] }
 0x143   :  { %v2902_v7 = vpack.c.bf16 %v380_v63, %v378_v62  ;;  %v361_v13 = vadd.f32 %v360_v6, %v132_v5 }
 0x144   :  { %v381_v20 = vmax.f32 %v359_v11, 0.0 }
 0x145   :  { %v364_v16 = vpop.f32.mrb[14].mxu0  ;;  %2903 = vmatprep.subr.bf16.mxu0 %v2902_v7  ;;  %3160 = vmatprep.subr.bf16.mxu1 %v2902_v7  ;;  %v382_v24 = vmax.f32 %v361_v13, 0.0 }
 0x146   :  { %v365_v17 = vadd.f32 %v364_v16, %v133_v10  ;;  %v366_v18 = vpop.f32.mrb[15].mxu0  ;;  %2905 = vmatpush1.bf16.msra.mxu0 %v2904_v3  ;;  %3164 = vmatpush1.bf16.msra.mxu1 %v2904_v3 }
 0x147   :  { %v367_v19 = vadd.f32 %v366_v18, %v134_v12  ;;  %v405_v12 = vld [vmem:[#allocation2 + $0xe0] sm:$0xff]  ;;  %v406_v18 = vld [vmem:[#allocation2 + $0xe8] sm:$0xff] }
 0x148   :  { %v383_v23 = vmax.f32 %v365_v17, 0.0 }
 0x149   :  { %v384_v25 = vmax.f32 %v367_v19, 0.0 }
 0x14a   :  { %v2908_v26 = vpack.c.bf16 %v383_v23, %v381_v20  ;;  %v397_v23 = vld [vmem:[#allocation2 + $0xa0] sm:$0xff] }
 0x14b   :  { %v2906_v29 = vpack.c.bf16 %v384_v25, %v382_v24 }
 0x14d   :  { %2907 = vmatprep.subr.bf16.mxu0 %v2906_v29  ;;  %3161 = vmatprep.subr.bf16.mxu1 %v2906_v29 }
 0x14e   :  { %2909 = vmatpush1.bf16.msra.mxu0 %v2908_v26  ;;  %3165 = vmatpush1.bf16.msra.mxu1 %v2908_v26 }
 0x151   :  { %2500 = vmatmul.mubr.msk.f32.vlgmr.msra.gmra.mrb[16].mxu0 %vm409_vm2, %v385_v30  ;;  %2504 = vmatmul.mubr.msk.f32.vlgmr.msra.gmra.mrb[0].mxu1 %vm409_vm2, %v389_v31  ;;  %v398_v31 = vld [vmem:[#allocation2 + $0xa8] sm:$0xff] }
 0x152   :  { %504 = vmatprep.mubr.f32.mxu0 %v3248_v57  ;;  %528 = vmatprep.mubr.f32.mxu1 %v3248_v57 }
 0x155   :  { %2501 = vmatmul.mubr.msk.f32.gmra.mrb[18].mxu0 %vm409_vm2, %v386_v32  ;;  %2505 = vmatmul.mubr.msk.f32.gmra.mrb[2].mxu1 %vm409_vm2, %v390_v35 }
 0x156   :  { %510 = vmatprep.mubr.f32.mxu0 %v3248_v57  ;;  %534 = vmatprep.mubr.f32.mxu1 %v3248_v57 }
 0x159   :  { %2502 = vmatmul.mubr.msk.f32.gmra.mrb[20].mxu0 %vm409_vm2, %v387_v36  ;;  %2506 = vmatmul.mubr.msk.f32.gmra.mrb[4].mxu1 %vm409_vm2, %v391_v37 }
 0x15a   :  { %516 = vmatprep.mubr.f32.mxu0 %v3248_v57  ;;  %540 = vmatprep.mubr.f32.mxu1 %v3248_v57 }
 0x15d   :  { %2503 = vmatmul.mubr.msk.f32.gmra.mrb[22].mxu0 %vm409_vm2, %v388_v38  ;;  %2507 = vmatmul.mubr.msk.f32.gmra.mrb[6].mxu1 %vm409_vm2, %v392_v41  ;;  %v399_v41 = vld [vmem:[#allocation2 + $0xb0] sm:$0xff] }
 0x15e   :  { %676 = vmatprep.mubr.f32.mxu1 %v3248_v57  ;;  %1032 = vmatprep.mubr.f32.mxu0 %v3248_v57 }
 0x224   :  { %v500_v47 = vpop.f32.mrb[16].mxu0  ;;  %v524_v48 = vpop.f32.mrb[0].mxu1 }
 0x225   :  { %v502_v51 = vpop.f32.mrb[17].mxu0  ;;  %v525_v52 = vadd.f32 %v524_v48, %v401_v42  ;;  %v526_v53 = vpop.f32.mrb[1].mxu1  ;;  %v501_v58 = vadd.f32 %v500_v47, %v393_v44  ;;  %v400_v47 = vld [vmem:[#allocation2 + $0xb8] sm:$0xff] }
 0x226   :  { %v527_v55 = vadd.f32 %v526_v53, %v402_v43  ;;  %v503_v61 = vadd.f32 %v502_v51, %v394_v50  ;;  %v407_v43 = vld [vmem:[#allocation2 + $0xf0] sm:$0xff]  ;;  %v408_v48 = vld [vmem:[#allocation2 + $0xf8] sm:$0xff] }
 0x227   :  { %v555_v3 = vmax.f32 %v525_v52, 0.0  ;;  %v547_v13 = vmax.f32 %v501_v58, 0.0 }
 0x228   :  { %v506_v62 = vpop.f32.mrb[18].mxu0  ;;  %v530_v63 = vpop.f32.mrb[2].mxu1  ;;  %v556_v10 = vmax.f32 %v527_v55, 0.0  ;;  %v548_v19 = vmax.f32 %v503_v61, 0.0 }
 0x229   :  { %v507_v1 = vadd.f32 %v506_v62, %v395_v54  ;;  %v508_v2 = vpop.f32.mrb[19].mxu0  ;;  %v531_v5 = vadd.f32 %v530_v63, %v403_v56  ;;  %v532_v6 = vpop.f32.mrb[3].mxu1 }
 0x22a   :  { %v509_v7 = vadd.f32 %v508_v2, %v396_v59  ;;  %v533_v11 = vadd.f32 %v532_v6, %v404_v60 }
 0x22b   :  { %v549_v16 = vmax.f32 %v507_v1, 0.0  ;;  %v557_v17 = vmax.f32 %v531_v5, 0.0 }
 0x22c   :  { %v550_v20 = vmax.f32 %v509_v7, 0.0  ;;  %v512_v24 = vpop.f32.mrb[20].mxu0  ;;  %v558_v25 = vmax.f32 %v533_v11, 0.0  ;;  %v536_v26 = vpop.f32.mrb[4].mxu1 }
 0x22d   :  { %v2912_v29 = vpack.c.bf16 %v549_v16, %v547_v13  ;;  %v2920_v30 = vpack.c.bf16 %v557_v17, %v555_v3  ;;  %v514_v32 = vpop.f32.mrb[21].mxu0  ;;  %v537_v35 = vadd.f32 %v536_v26, %v405_v12  ;;  %v538_v36 = vpop.f32.mrb[5].mxu1  ;;  %v513_v44 = vadd.f32 %v512_v24, %v397_v23  ;;  %v2508_v12 = vld [vmem:[%s4173_s3 + $0x40] sm:$0xff]  ;;  %v2509_v13 = vld [vmem:[%s4173_s3 + $0x48] sm:$0xff]  ;;  %v2510_v16 = vld [vmem:[%s4173_s3 + $0x50] sm:$0xff] }
 0x22e   :  { %v2910_v37 = vpack.c.bf16 %v550_v20, %v548_v19  ;;  %v2918_v38 = vpack.c.bf16 %v558_v25, %v556_v10  ;;  %v539_v42 = vadd.f32 %v538_v36, %v406_v18  ;;  %v515_v50 = vadd.f32 %v514_v32, %v398_v31  ;;  %v2511_v17 = vld [vmem:[%s4173_s3 + $0x58] sm:$0xff]  ;;  %v2512_v18 = vld [vmem:[%s4173_s3 + $0x60] sm:$0xff]  ;;  %v2513_v19 = vld [vmem:[%s4173_s3 + $0x68] sm:$0xff] }
 0x22f   :  { %v559_v55 = vmax.f32 %v537_v35, 0.0  ;;  %v551_v62 = vmax.f32 %v513_v44, 0.0  ;;  %v2514_v20 = vld [vmem:[%s4173_s3 + $0x70] sm:$0xff]  ;;  %v2515_v23 = vld [vmem:[%s4173_s3 + $0x78] sm:$0xff]  ;;  %v572_v24 = vld [vmem:[#allocation2 + $0x100] sm:$0xff] }
 0x230   :  { %v518_v51 = vpop.f32.mrb[22].mxu0  ;;  %2911 = vmatprep.subr.bf16.mxu1 %v2910_v37  ;;  %v542_v52 = vpop.f32.mrb[6].mxu1  ;;  %v560_v60 = vmax.f32 %v539_v42, 0.0  ;;  %v552_v2 = vmax.f32 %v515_v50, 0.0  ;;  %v573_v26 = vld [vmem:[#allocation2 + $0x108] sm:$0xff]  ;;  %v575_v32 = vld [vmem:[#allocation2 + $0x118] sm:$0xff] }
 0x231   :  { %v519_v53 = vadd.f32 %v518_v51, %v399_v41  ;;  %v520_v54 = vpop.f32.mrb[23].mxu0  ;;  %2913 = vmatpush1.bf16.msra.mxu1 %v2912_v29  ;;  %v543_v56 = vadd.f32 %v542_v52, %v407_v43  ;;  %v544_v58 = vpop.f32.mrb[7].mxu1  ;;  %v577_v52 = vld [vmem:[#allocation2 + $0x128] sm:$0xff] }
 0x232   :  { %v521_v59 = vadd.f32 %v520_v54, %v400_v47  ;;  %v545_v61 = vadd.f32 %v544_v58, %v408_v48  ;;  %v576_v48 = vld [vmem:[#allocation2 + $0x120] sm:$0xff]  ;;  %v579_v58 = vld [vmem:[#allocation2 + $0x138] sm:$0xff] }
 0x233   :  { %v553_v63 = vmax.f32 %v519_v53, 0.0  ;;  %v561_v1 = vmax.f32 %v543_v56, 0.0 }
 0x234   :  { %v554_v3 = vmax.f32 %v521_v59, 0.0  ;;  %v562_v5 = vmax.f32 %v545_v61, 0.0 }
 0x235   :  { %v2916_v6 = vpack.c.bf16 %v553_v63, %v551_v62  ;;  %v2924_v7 = vpack.c.bf16 %v561_v1, %v559_v55  ;;  %v578_v55 = vld [vmem:[#allocation2 + $0x130] sm:$0xff] }
 0x236   :  { %v2914_v10 = vpack.c.bf16 %v554_v3, %v552_v2  ;;  %v2922_v11 = vpack.c.bf16 %v562_v5, %v560_v60 }
 0x238   :  { %2915 = vmatprep.subr.bf16.mxu1 %v2914_v10 }
 0x239   :  { %2917 = vmatpush1.bf16.msra.mxu1 %v2916_v6  ;;  %v580_v6 = vld [vmem:[#allocation2 + $0x140] sm:$0xff] }
 0x23a   :  { %2919 = vmatprep.subr.bf16.mxu1 %v2918_v38 }
 0x23d   :  { %2921 = vmatpush1.bf16.msra.mxu1 %v2920_v30  ;;  %v574_v30 = vld [vmem:[#allocation2 + $0x110] sm:$0xff] }
 0x23e   :  { %2923 = vmatprep.subr.bf16.mxu1 %v2922_v11  ;;  %v581_v11 = vld [vmem:[#allocation2 + $0x148] sm:$0xff] }
 0x241   :  { %2925 = vmatpush1.bf16.msra.mxu1 %v2924_v7 }
 0x244   :  { %2516 = vmatmul.mubr.msk.f32.vlgmr.msra.gmra.mrb[8].mxu1 %vm409_vm2, %v2508_v12 }
 0x245   :  { %682 = vmatprep.mubr.f32.mxu1 %v3248_v57 }
 0x248   :  { %2517 = vmatmul.mubr.msk.f32.gmra.mrb[10].mxu1 %vm409_vm2, %v2509_v13 }
 0x249   :  { %688 = vmatprep.mubr.f32.mxu1 %v3248_v57 }
 0x24c   :  { %2518 = vmatmul.mubr.msk.f32.gmra.mrb[12].mxu1 %vm409_vm2, %v2510_v16  ;;  %v582_v16 = vld [vmem:[#allocation2 + $0x150] sm:$0xff] }
 0x24d   :  { %694 = vmatprep.mubr.f32.mxu1 %v3248_v57 }
 0x250   :  { %2519 = vmatmul.mubr.msk.f32.gmra.mrb[14].mxu1 %vm409_vm2, %v2511_v17 }
 0x251   :  { %700 = vmatprep.mubr.f32.mxu1 %v3248_v57 }
 0x254   :  { %2520 = vmatmul.mubr.msk.f32.gmra.mrb[16].mxu1 %vm409_vm2, %v2512_v18  ;;  %v583_v18 = vld [vmem:[#allocation2 + $0x158] sm:$0xff] }
 0x255   :  { %706 = vmatprep.mubr.f32.mxu1 %v3248_v57 }
 0x258   :  { %2521 = vmatmul.mubr.msk.f32.gmra.mrb[18].mxu1 %vm409_vm2, %v2513_v19 }
 0x259   :  { %712 = vmatprep.mubr.f32.mxu1 %v3248_v57 }
 0x25c   :  { %2522 = vmatmul.mubr.msk.f32.gmra.mrb[20].mxu1 %vm409_vm2, %v2514_v20 }
 0x25d   :  { %718 = vmatprep.mubr.f32.mxu1 %v3248_v57 }
 0x260   :  { %2523 = vmatmul.mubr.msk.f32.gmra.mrb[22].mxu1 %vm409_vm2, %v2515_v23 }
 0x261   :  { %854 = vmatprep.mubr.f32.mxu1 %v3248_v57 }
 0x317   :  { %v678_v25 = vpop.f32.mrb[8].mxu1 }
 0x318   :  { %v680_v29 = vpop.f32.mrb[9].mxu1  ;;  %v679_v31 = vadd.f32 %v678_v25, %v572_v24 }
 0x319   :  { %v681_v35 = vadd.f32 %v680_v29, %v573_v26 }
 0x31a   :  { %v725_v42 = vmax.f32 %v679_v31, 0.0 }
 0x31b   :  { %v684_v36 = vpop.f32.mrb[10].mxu1  ;;  %v726_v44 = vmax.f32 %v681_v35, 0.0 }
 0x31c   :  { %v685_v37 = vadd.f32 %v684_v36, %v574_v30  ;;  %v686_v38 = vpop.f32.mrb[11].mxu1 }
 0x31d   :  { %v687_v41 = vadd.f32 %v686_v38, %v575_v32  ;;  %v584_v32 = vld [vmem:[#allocation2 + $0x160] sm:$0xff] }
 0x31e   :  { %v727_v43 = vmax.f32 %v685_v37, 0.0  ;;  %v585_v37 = vld [vmem:[#allocation2 + $0x168] sm:$0xff] }
 0x31f   :  { %v728_v47 = vmax.f32 %v687_v41, 0.0  ;;  %v690_v50 = vpop.f32.mrb[12].mxu1 }
 0x320   :  { %v2928_v51 = vpack.c.bf16 %v727_v43, %v725_v42  ;;  %v692_v53 = vpop.f32.mrb[13].mxu1  ;;  %v691_v56 = vadd.f32 %v690_v50, %v576_v48  ;;  %v586_v42 = vld [vmem:[#allocation2 + $0x170] sm:$0xff] }
 0x321   :  { %v2926_v54 = vpack.c.bf16 %v728_v47, %v726_v44  ;;  %v693_v59 = vadd.f32 %v692_v53, %v577_v52  ;;  %v587_v44 = vld [vmem:[#allocation2 + $0x178] sm:$0xff] }
 0x322   :  { %v729_v1 = vmax.f32 %v691_v56, 0.0 }
 0x323   :  { %v696_v60 = vpop.f32.mrb[14].mxu1  ;;  %2927 = vmatprep.subr.bf16.mxu1 %v2926_v54  ;;  %v730_v3 = vmax.f32 %v693_v59, 0.0 }
 0x324   :  { %v697_v61 = vadd.f32 %v696_v60, %v578_v55  ;;  %v698_v62 = vpop.f32.mrb[15].mxu1  ;;  %2929 = vmatpush1.bf16.msra.mxu1 %v2928_v51  ;;  %v2524_v60 = vld [vmem:[%s4173_s3 + $0x80] sm:$0xff] }
 0x325   :  { %v699_v63 = vadd.f32 %v698_v62, %v579_v58  ;;  %v2526_v62 = vld [vmem:[%s4173_s3 + $0x90] sm:$0xff] }
 0x326   :  { %v731_v2 = vmax.f32 %v697_v61, 0.0  ;;  %v2525_v61 = vld [vmem:[%s4173_s3 + $0x88] sm:$0xff] }
 0x327   :  { %v732_v5 = vmax.f32 %v699_v63, 0.0  ;;  %v702_v7 = vpop.f32.mrb[16].mxu1  ;;  %v2527_v63 = vld [vmem:[%s4173_s3 + $0x98] sm:$0xff] }
 0x328   :  { %v2932_v10 = vpack.c.bf16 %v731_v2, %v729_v1  ;;  %v704_v12 = vpop.f32.mrb[17].mxu1  ;;  %v703_v17 = vadd.f32 %v702_v7, %v580_v6  ;;  %v2528_v1 = vld [vmem:[%s4173_s3 + $0xa0] sm:$0xff]  ;;  %v2529_v2 = vld [vmem:[%s4173_s3 + $0xa8] sm:$0xff] }
 0x329   :  { %v2930_v13 = vpack.c.bf16 %v732_v5, %v730_v3  ;;  %v705_v19 = vadd.f32 %v704_v12, %v581_v11  ;;  %v2530_v3 = vld [vmem:[%s4173_s3 + $0xb0] sm:$0xff]  ;;  %v2531_v5 = vld [vmem:[%s4173_s3 + $0xb8] sm:$0xff]  ;;  %v750_v6 = vld [vmem:[#allocation2 + $0x180] sm:$0xff] }
 0x32a   :  { %v733_v26 = vmax.f32 %v703_v17, 0.0  ;;  %v752_v12 = vld [vmem:[#allocation2 + $0x190] sm:$0xff] }
 0x32b   :  { %v708_v20 = vpop.f32.mrb[18].mxu1  ;;  %2931 = vmatprep.subr.bf16.mxu1 %v2930_v13  ;;  %v734_v30 = vmax.f32 %v705_v19, 0.0 }
 0x32c   :  { %v709_v23 = vadd.f32 %v708_v20, %v582_v16  ;;  %v710_v24 = vpop.f32.mrb[19].mxu1  ;;  %2933 = vmatpush1.bf16.msra.mxu1 %v2932_v10  ;;  %v751_v10 = vld [vmem:[#allocation2 + $0x188] sm:$0xff]  ;;  %v753_v16 = vld [vmem:[#allocation2 + $0x198] sm:$0xff] }
 0x32d   :  { %v711_v25 = vadd.f32 %v710_v24, %v583_v18 }
 0x32e   :  { %v735_v29 = vmax.f32 %v709_v23, 0.0 }
 0x32f   :  { %v736_v31 = vmax.f32 %v711_v25, 0.0  ;;  %v714_v35 = vpop.f32.mrb[20].mxu1 }
 0x330   :  { %v2936_v36 = vpack.c.bf16 %v735_v29, %v733_v26  ;;  %v716_v38 = vpop.f32.mrb[21].mxu1  ;;  %v715_v43 = vadd.f32 %v714_v35, %v584_v32  ;;  %v755_v35 = vld [vmem:[#allocation2 + $0x1a8] sm:$0xff] }
 0x331   :  { %v2934_v41 = vpack.c.bf16 %v736_v31, %v734_v30  ;;  %v717_v47 = vadd.f32 %v716_v38, %v585_v37  ;;  %v754_v30 = vld [vmem:[#allocation2 + $0x1a0] sm:$0xff]  ;;  %v756_v38 = vld [vmem:[#allocation2 + $0x1b0] sm:$0xff] }
 0x332   :  { %v737_v53 = vmax.f32 %v715_v43, 0.0 }
 0x333   :  { %v720_v48 = vpop.f32.mrb[22].mxu1  ;;  %2935 = vmatprep.subr.bf16.mxu1 %v2934_v41  ;;  %v738_v55 = vmax.f32 %v717_v47, 0.0 }
 0x334   :  { %v721_v50 = vadd.f32 %v720_v48, %v586_v42  ;;  %v722_v51 = vpop.f32.mrb[23].mxu1  ;;  %2937 = vmatpush1.bf16.msra.mxu1 %v2936_v36  ;;  %v757_v42 = vld [vmem:[#allocation2 + $0x1b8] sm:$0xff] }
 0x335   :  { %v723_v52 = vadd.f32 %v722_v51, %v587_v44 }
 0x336   :  { %v739_v54 = vmax.f32 %v721_v50, 0.0 }
 0x337   :  { %v740_v56 = vmax.f32 %v723_v52, 0.0 }
 0x338   :  { %v2940_v58 = vpack.c.bf16 %v739_v54, %v737_v53 }
 0x339   :  { %v2938_v59 = vpack.c.bf16 %v740_v56, %v738_v55  ;;  %v758_v55 = vld [vmem:[#allocation2 + $0x1c0] sm:$0xff] }
 0x33b   :  { %2939 = vmatprep.subr.bf16.mxu1 %v2938_v59  ;;  %v759_v59 = vld [vmem:[#allocation2 + $0x1c8] sm:$0xff] }
 0x33c   :  { %2941 = vmatpush1.bf16.msra.mxu1 %v2940_v58 }
 0x33f   :  { %2532 = vmatmul.mubr.msk.f32.vlgmr.msra.gmra.mrb[24].mxu1 %vm409_vm2, %v2524_v60 }
 0x340   :  { %860 = vmatprep.mubr.f32.mxu1 %v3248_v57 }
 0x343   :  { %2533 = vmatmul.mubr.msk.f32.gmra.mrb[26].mxu1 %vm409_vm2, %v2525_v61 }
 0x344   :  { %866 = vmatprep.mubr.f32.mxu1 %v3248_v57 }
 0x347   :  { %2534 = vmatmul.mubr.msk.f32.gmra.mrb[28].mxu1 %vm409_vm2, %v2526_v62  ;;  %v760_v62 = vld [vmem:[#allocation2 + $0x1d0] sm:$0xff] }
 0x348   :  { %872 = vmatprep.mubr.f32.mxu1 %v3248_v57 }
 0x34b   :  { %2535 = vmatmul.mubr.msk.f32.gmra.mrb[30].mxu1 %vm409_vm2, %v2527_v63 }
 0x34c   :  { %878 = vmatprep.mubr.f32.mxu1 %v3248_v57 }
 0x34f   :  { %2536 = vmatmul.mubr.msk.f32.gmra.mrb[32].mxu1 %vm409_vm2, %v2528_v1  ;;  %v761_v1 = vld [vmem:[#allocation2 + $0x1d8] sm:$0xff] }
 0x350   :  { %884 = vmatprep.mubr.f32.mxu1 %v3248_v57 }
 0x353   :  { %2537 = vmatmul.mubr.msk.f32.gmra.mrb[34].mxu1 %vm409_vm2, %v2529_v2 }
 0x354   :  { %890 = vmatprep.mubr.f32.mxu1 %v3248_v57 }
 0x357   :  { %2538 = vmatmul.mubr.msk.f32.gmra.mrb[36].mxu1 %vm409_vm2, %v2530_v3 }
 0x358   :  { %896 = vmatprep.mubr.f32.mxu1 %v3248_v57 }
 0x35b   :  { %2539 = vmatmul.mubr.msk.f32.gmra.mrb[38].mxu1 %vm409_vm2, %v2531_v5 }
 0x35c   :  { %1203 = vmatprep.mubr.f32.mxu1 %v3248_v57 }
 0x412   :  { %v856_v7 = vpop.f32.mrb[24].mxu1 }
 0x413   :  { %v858_v11 = vpop.f32.mrb[25].mxu1  ;;  %v857_v13 = vadd.f32 %v856_v7, %v750_v6 }
 0x414   :  { %v859_v17 = vadd.f32 %v858_v11, %v751_v10 }
 0x415   :  { %v903_v24 = vmax.f32 %v857_v13, 0.0 }
 0x416   :  { %v862_v18 = vpop.f32.mrb[26].mxu1  ;;  %v904_v26 = vmax.f32 %v859_v17, 0.0 }
 0x417   :  { %v863_v19 = vadd.f32 %v862_v18, %v752_v12  ;;  %v864_v20 = vpop.f32.mrb[27].mxu1 }
 0x418   :  { %v865_v23 = vadd.f32 %v864_v20, %v753_v16  ;;  %v762_v16 = vld [vmem:[#allocation2 + $0x1e0] sm:$0xff] }
 0x419   :  { %v905_v25 = vmax.f32 %v863_v19, 0.0  ;;  %v763_v19 = vld [vmem:[#allocation2 + $0x1e8] sm:$0xff] }
 0x41a   :  { %v906_v29 = vmax.f32 %v865_v23, 0.0  ;;  %v868_v31 = vpop.f32.mrb[28].mxu1 }
 0x41b   :  { %v2944_v32 = vpack.c.bf16 %v905_v25, %v903_v24  ;;  %v870_v36 = vpop.f32.mrb[29].mxu1  ;;  %v869_v41 = vadd.f32 %v868_v31, %v754_v30  ;;  %v764_v24 = vld [vmem:[#allocation2 + $0x1f0] sm:$0xff] }
 0x41c   :  { %v2942_v37 = vpack.c.bf16 %v906_v29, %v904_v26  ;;  %v871_v43 = vadd.f32 %v870_v36, %v755_v35  ;;  %v765_v26 = vld [vmem:[#allocation2 + $0x1f8] sm:$0xff] }
 0x41d   :  { %v907_v51 = vmax.f32 %v869_v41, 0.0 }
 0x41e   :  { %v874_v44 = vpop.f32.mrb[30].mxu1  ;;  %2943 = vmatprep.subr.bf16.mxu0 %v2942_v37  ;;  %v908_v53 = vmax.f32 %v871_v43, 0.0 }
 0x41f   :  { %v875_v47 = vadd.f32 %v874_v44, %v756_v38  ;;  %v876_v48 = vpop.f32.mrb[31].mxu1  ;;  %2945 = vmatpush1.bf16.msra.mxu0 %v2944_v32  ;;  %v2540_v44 = vld [vmem:[%s4173_s3 + $0xc0] sm:$0xff] }
 0x420   :  { %v877_v50 = vadd.f32 %v876_v48, %v757_v42  ;;  %v2542_v48 = vld [vmem:[%s4173_s3 + $0xd0] sm:$0xff] }
 0x421   :  { %v909_v52 = vmax.f32 %v875_v47, 0.0  ;;  %v2541_v47 = vld [vmem:[%s4173_s3 + $0xc8] sm:$0xff] }
 0x422   :  { %v910_v54 = vmax.f32 %v877_v50, 0.0  ;;  %v880_v56 = vpop.f32.mrb[32].mxu1  ;;  %v2543_v50 = vld [vmem:[%s4173_s3 + $0xd8] sm:$0xff] }
 0x423   :  { %v2948_v58 = vpack.c.bf16 %v909_v52, %v907_v51  ;;  %v882_v60 = vpop.f32.mrb[33].mxu1  ;;  %v881_v63 = vadd.f32 %v880_v56, %v758_v55  ;;  %v2544_v51 = vld [vmem:[%s4173_s3 + $0xe0] sm:$0xff]  ;;  %v2545_v52 = vld [vmem:[%s4173_s3 + $0xe8] sm:$0xff] }
 0x424   :  { %v2946_v61 = vpack.c.bf16 %v910_v54, %v908_v53  ;;  %v883_v2 = vadd.f32 %v882_v60, %v759_v59  ;;  %v2546_v53 = vld [vmem:[%s4173_s3 + $0xf0] sm:$0xff]  ;;  %v2547_v54 = vld [vmem:[%s4173_s3 + $0xf8] sm:$0xff]  ;;  %v928_v55 = vld [vmem:[#allocation2 + $0x200] sm:$0xff] }
 0x425   :  { %v911_v10 = vmax.f32 %v881_v63, 0.0  ;;  %v930_v60 = vld [vmem:[#allocation2 + $0x210] sm:$0xff] }
 0x426   :  { %v886_v3 = vpop.f32.mrb[34].mxu1  ;;  %2947 = vmatprep.subr.bf16.mxu0 %v2946_v61  ;;  %v912_v12 = vmax.f32 %v883_v2, 0.0 }
 0x427   :  { %v887_v5 = vadd.f32 %v886_v3, %v760_v62  ;;  %v888_v6 = vpop.f32.mrb[35].mxu1  ;;  %2949 = vmatpush1.bf16.msra.mxu0 %v2948_v58  ;;  %v929_v58 = vld [vmem:[#allocation2 + $0x208] sm:$0xff]  ;;  %v931_v62 = vld [vmem:[#allocation2 + $0x218] sm:$0xff] }
 0x428   :  { %v889_v7 = vadd.f32 %v888_v6, %v761_v1 }
 0x429   :  { %v913_v11 = vmax.f32 %v887_v5, 0.0 }
 0x42a   :  { %v914_v13 = vmax.f32 %v889_v7, 0.0  ;;  %v892_v17 = vpop.f32.mrb[36].mxu1 }
 0x42b   :  { %v2952_v18 = vpack.c.bf16 %v913_v11, %v911_v10  ;;  %v894_v20 = vpop.f32.mrb[37].mxu1  ;;  %v893_v25 = vadd.f32 %v892_v17, %v762_v16  ;;  %v933_v17 = vld [vmem:[#allocation2 + $0x228] sm:$0xff] }
 0x42c   :  { %v2950_v23 = vpack.c.bf16 %v914_v13, %v912_v12  ;;  %v895_v29 = vadd.f32 %v894_v20, %v763_v19  ;;  %v932_v12 = vld [vmem:[#allocation2 + $0x220] sm:$0xff]  ;;  %v934_v20 = vld [vmem:[#allocation2 + $0x230] sm:$0xff] }
 0x42d   :  { %v915_v36 = vmax.f32 %v893_v25, 0.0 }
 0x42e   :  { %v898_v30 = vpop.f32.mrb[38].mxu1  ;;  %2951 = vmatprep.subr.bf16.mxu0 %v2950_v23  ;;  %v916_v38 = vmax.f32 %v895_v29, 0.0 }
 0x42f   :  { %v899_v31 = vadd.f32 %v898_v30, %v764_v24  ;;  %v900_v32 = vpop.f32.mrb[39].mxu1  ;;  %2953 = vmatpush1.bf16.msra.mxu0 %v2952_v18  ;;  %v935_v24 = vld [vmem:[#allocation2 + $0x238] sm:$0xff] }
 0x430   :  { %v901_v35 = vadd.f32 %v900_v32, %v765_v26 }
 0x431   :  { %v917_v37 = vmax.f32 %v899_v31, 0.0 }
 0x432   :  { %v918_v41 = vmax.f32 %v901_v35, 0.0 }
 0x433   :  { %v2956_v42 = vpack.c.bf16 %v917_v37, %v915_v36 }
 0x434   :  { %v2954_v43 = vpack.c.bf16 %v918_v41, %v916_v38  ;;  %v936_v38 = vld [vmem:[#allocation2 + $0x240] sm:$0xff] }
 0x436   :  { %2955 = vmatprep.subr.bf16.mxu0 %v2954_v43  ;;  %v937_v43 = vld [vmem:[#allocation2 + $0x248] sm:$0xff] }
 0x437   :  { %2957 = vmatpush1.bf16.msra.mxu0 %v2956_v42 }
 0x43a   :  { %2548 = vmatmul.mubr.msk.f32.vlgmr.msra.gmra.mrb[24].mxu0 %vm409_vm2, %v2540_v44 }
 0x43b   :  { %1038 = vmatprep.mubr.f32.mxu0 %v3248_v57 }
 0x43e   :  { %2549 = vmatmul.mubr.msk.f32.gmra.mrb[26].mxu0 %vm409_vm2, %v2541_v47 }
 0x43f   :  { %1044 = vmatprep.mubr.f32.mxu0 %v3248_v57 }
 0x442   :  { %2550 = vmatmul.mubr.msk.f32.gmra.mrb[28].mxu0 %vm409_vm2, %v2542_v48  ;;  %v938_v48 = vld [vmem:[#allocation2 + $0x250] sm:$0xff] }
 0x443   :  { %1050 = vmatprep.mubr.f32.mxu0 %v3248_v57 }
 0x446   :  { %2551 = vmatmul.mubr.msk.f32.gmra.mrb[30].mxu0 %vm409_vm2, %v2543_v50 }
 0x447   :  { %1056 = vmatprep.mubr.f32.mxu0 %v3248_v57 }
 0x44a   :  { %2552 = vmatmul.mubr.msk.f32.gmra.mrb[32].mxu0 %vm409_vm2, %v2544_v51  ;;  %v939_v51 = vld [vmem:[#allocation2 + $0x258] sm:$0xff] }
 0x44b   :  { %1062 = vmatprep.mubr.f32.mxu0 %v3248_v57 }
 0x44e   :  { %2553 = vmatmul.mubr.msk.f32.gmra.mrb[34].mxu0 %vm409_vm2, %v2545_v52 }
 0x44f   :  { %1068 = vmatprep.mubr.f32.mxu0 %v3248_v57 }
 0x452   :  { %2554 = vmatmul.mubr.msk.f32.gmra.mrb[36].mxu0 %vm409_vm2, %v2546_v53 }
 0x453   :  { %1074 = vmatprep.mubr.f32.mxu0 %v3248_v57 }
 0x456   :  { %2555 = vmatmul.mubr.msk.f32.gmra.mrb[38].mxu0 %vm409_vm2, %v2547_v54 }
 0x457   :  { %1550 = vmatprep.mubr.f32.mxu0 %v3248_v57 }
 0x50d   :  { %v1034_v56 = vpop.f32.mrb[24].mxu0 }
 0x50e   :  { %v1036_v59 = vpop.f32.mrb[25].mxu0  ;;  %v1035_v61 = vadd.f32 %v1034_v56, %v928_v55 }
 0x50f   :  { %v1037_v63 = vadd.f32 %v1036_v59, %v929_v58 }
 0x510   :  { %v1081_v6 = vmax.f32 %v1035_v61, 0.0 }
 0x511   :  { %v1040_v1 = vpop.f32.mrb[26].mxu0  ;;  %v1082_v10 = vmax.f32 %v1037_v63, 0.0 }
 0x512   :  { %v1041_v2 = vadd.f32 %v1040_v1, %v930_v60  ;;  %v1042_v3 = vpop.f32.mrb[27].mxu0 }
 0x513   :  { %v1043_v5 = vadd.f32 %v1042_v3, %v931_v62  ;;  %v940_v62 = vld [vmem:[#allocation2 + $0x260] sm:$0xff] }
 0x514   :  { %v1083_v7 = vmax.f32 %v1041_v2, 0.0  ;;  %v941_v2 = vld [vmem:[#allocation2 + $0x268] sm:$0xff] }
 0x515   :  { %v1084_v11 = vmax.f32 %v1043_v5, 0.0  ;;  %v1046_v13 = vpop.f32.mrb[28].mxu0 }
 0x516   :  { %v2960_v16 = vpack.c.bf16 %v1083_v7, %v1081_v6  ;;  %v1048_v18 = vpop.f32.mrb[29].mxu0  ;;  %v1047_v23 = vadd.f32 %v1046_v13, %v932_v12  ;;  %v942_v6 = vld [vmem:[#allocation2 + $0x270] sm:$0xff] }
 0x517   :  { %v2958_v19 = vpack.c.bf16 %v1084_v11, %v1082_v10  ;;  %v1049_v25 = vadd.f32 %v1048_v18, %v933_v17  ;;  %v943_v10 = vld [vmem:[#allocation2 + $0x278] sm:$0xff] }
 0x518   :  { %v1085_v32 = vmax.f32 %v1047_v23, 0.0 }
 0x519   :  { %v1052_v26 = vpop.f32.mrb[30].mxu0  ;;  %2959 = vmatprep.subr.bf16.mxu1 %v2958_v19  ;;  %v1086_v36 = vmax.f32 %v1049_v25, 0.0 }
 0x51a   :  { %v1053_v29 = vadd.f32 %v1052_v26, %v934_v20  ;;  %v1054_v30 = vpop.f32.mrb[31].mxu0  ;;  %2961 = vmatpush1.bf16.msra.mxu1 %v2960_v16  ;;  %v2564_v26 = vld [vmem:[%s4173_s3 + $0x100] sm:$0xff] }
 0x51b   :  { %v1055_v31 = vadd.f32 %v1054_v30, %v935_v24  ;;  %v2566_v30 = vld [vmem:[%s4173_s3 + $0x110] sm:$0xff] }
 0x51c   :  { %v1087_v35 = vmax.f32 %v1053_v29, 0.0  ;;  %v2565_v29 = vld [vmem:[%s4173_s3 + $0x108] sm:$0xff] }
 0x51d   :  { %v1088_v37 = vmax.f32 %v1055_v31, 0.0  ;;  %v1058_v41 = vpop.f32.mrb[32].mxu0  ;;  %v2556_v31 = vld [vmem:[%s4172_s2 + $0x40] sm:$0xff] }
 0x51e   :  { %v2964_v42 = vpack.c.bf16 %v1087_v35, %v1085_v32  ;;  %v1060_v44 = vpop.f32.mrb[33].mxu0  ;;  %v1059_v50 = vadd.f32 %v1058_v41, %v936_v38  ;;  %v1392_v35 = vld [vmem:[#allocation2 + $0x298] sm:$0xff] }
 0x51f   :  { %v2962_v47 = vpack.c.bf16 %v1088_v37, %v1086_v36  ;;  %v1061_v52 = vadd.f32 %v1060_v44, %v937_v43 }
 0x520   :  { %v1089_v58 = vmax.f32 %v1059_v50, 0.0 }
 0x521   :  { %v1064_v53 = vpop.f32.mrb[34].mxu0  ;;  %2963 = vmatprep.subr.bf16.mxu1 %v2962_v47  ;;  %v1090_v60 = vmax.f32 %v1061_v52, 0.0 }
 0x522   :  { %v1065_v54 = vadd.f32 %v1064_v53, %v938_v48  ;;  %v1066_v55 = vpop.f32.mrb[35].mxu0  ;;  %2965 = vmatpush1.bf16.msra.mxu1 %v2964_v42 }
 0x523   :  { %v1067_v56 = vadd.f32 %v1066_v55, %v939_v51  ;;  %v1393_v51 = vld [vmem:[#allocation2 + $0x2a0] sm:$0xff] }
 0x524   :  { %v1091_v59 = vmax.f32 %v1065_v54, 0.0  ;;  %v1394_v54 = vld [vmem:[#allocation2 + $0x2a8] sm:$0xff] }
 0x525   :  { %v1092_v61 = vmax.f32 %v1067_v56, 0.0  ;;  %v1070_v63 = vpop.f32.mrb[36].mxu0  ;;  %v1395_v56 = vld [vmem:[#allocation2 + $0x2b0] sm:$0xff] }
 0x526   :  { %v2968_v1 = vpack.c.bf16 %v1091_v59, %v1089_v58  ;;  %v1072_v3 = vpop.f32.mrb[37].mxu0  ;;  %v1071_v7 = vadd.f32 %v1070_v63, %v940_v62  ;;  %v1396_v59 = vld [vmem:[#allocation2 + $0x2b8] sm:$0xff] }
 0x527   :  { %v2966_v5 = vpack.c.bf16 %v1092_v61, %v1090_v60  ;;  %v1073_v11 = vadd.f32 %v1072_v3, %v941_v2 }
 0x528   :  { %v1093_v18 = vmax.f32 %v1071_v7, 0.0 }
 0x529   :  { %v1076_v12 = vpop.f32.mrb[38].mxu0  ;;  %2967 = vmatprep.subr.bf16.mxu1 %v2966_v5  ;;  %v1094_v20 = vmax.f32 %v1073_v11, 0.0 }
 0x52a   :  { %v1077_v13 = vadd.f32 %v1076_v12, %v942_v6  ;;  %v1078_v16 = vpop.f32.mrb[39].mxu0  ;;  %2969 = vmatpush1.bf16.msra.mxu1 %v2968_v1 }
 0x52b   :  { %v1079_v17 = vadd.f32 %v1078_v16, %v943_v10  ;;  %v1397_v10 = vld [vmem:[#allocation2 + $0x2c0] sm:$0xff] }
 0x52c   :  { %v1095_v19 = vmax.f32 %v1077_v13, 0.0  ;;  %v1398_v13 = vld [vmem:[#allocation2 + $0x2c8] sm:$0xff] }
 0x52d   :  { %v1096_v23 = vmax.f32 %v1079_v17, 0.0  ;;  %v1399_v17 = vld [vmem:[#allocation2 + $0x2d0] sm:$0xff] }
 0x52e   :  { %v2972_v24 = vpack.c.bf16 %v1095_v19, %v1093_v18  ;;  %v1400_v19 = vld [vmem:[#allocation2 + $0x2d8] sm:$0xff] }
 0x52f   :  { %v2970_v25 = vpack.c.bf16 %v1096_v23, %v1094_v20 }
 0x531   :  { %2971 = vmatprep.subr.bf16.mxu1 %v2970_v25 }
 0x532   :  { %2973 = vmatpush1.bf16.msra.mxu1 %v2972_v24 }
 0x533   :  { %2976 = vmatprep.subr.msk.bf16.mxu1 %vm3314_vm1, %v3327_v4  ;;  %v2567_v4 = vld [vmem:[%s4173_s3 + $0x118] sm:$0xff] }
 0x535   :  { %2572 = vmatmul.mubr.msk.f32.vlgmr.msra.gmra.mrb[40].mxu1 %vm409_vm2, %v2564_v26 }
 0x536   :  { %1209 = vmatprep.mubr.f32.mxu1 %v3248_v57 }
 0x539   :  { %2573 = vmatmul.mubr.msk.f32.gmra.mrb[42].mxu1 %vm409_vm2, %v2565_v29 }
 0x53a   :  { %1215 = vmatprep.mubr.f32.mxu1 %v3248_v57 }
 0x53b   :  { %2979 = vmatpush3.bf16.xpose.msk.msra.mxu1 %vm3314_vm1, %v3338_v8  ;;  %v2568_v8 = vld [vmem:[%s4173_s3 + $0x120] sm:$0xff] }
 0x53c   :  { %2982 = vmatprep.subr.msk.bf16.mxu1 %vm3314_vm1, %v3340_v9  ;;  %v2569_v9 = vld [vmem:[%s4173_s3 + $0x128] sm:$0xff] }
 0x53d   :  { %2574 = vmatmul.mubr.msk.f32.gmra.mrb[44].mxu1 %vm409_vm2, %v2566_v30 }
 0x53e   :  { %1221 = vmatprep.mubr.f32.mxu1 %v3248_v57 }
 0x541   :  { %2575 = vmatmul.mubr.msk.f32.gmra.mrb[46].mxu1 %vm409_vm2, %v2567_v4 }
 0x542   :  { %1227 = vmatprep.mubr.f32.mxu1 %v3248_v57 }
 0x543   :  { %2985 = vmatpush3.bf16.xpose.msk.msra.mxu1 %vm3314_vm1, %v3363_v14  ;;  %v2570_v14 = vld [vmem:[%s4173_s3 + $0x130] sm:$0xff] }
 0x544   :  { %2988 = vmatprep.subr.msk.bf16.mxu1 %vm3314_vm1, %v3365_v15  ;;  %v2571_v15 = vld [vmem:[%s4173_s3 + $0x138] sm:$0xff] }
 0x545   :  { %2576 = vmatmul.mubr.msk.f32.gmra.mrb[48].mxu1 %vm409_vm2, %v2568_v8 }
 0x546   :  { %1233 = vmatprep.mubr.f32.mxu1 %v3248_v57 }
 0x549   :  { %2577 = vmatmul.mubr.msk.f32.gmra.mrb[50].mxu1 %vm409_vm2, %v2569_v9 }
 0x54a   :  { %1239 = vmatprep.mubr.f32.mxu1 %v3248_v57 }
 0x54b   :  { %2991 = vmatpush3.bf16.xpose.msk.msra.mxu1 %vm3314_vm1, %v3389_v21  ;;  %v2557_v21 = vld [vmem:[%s4172_s2 + $0x48] sm:$0xff] }
 0x54c   :  { %2994 = vmatprep.subr.msk.bf16.mxu1 %vm3314_vm1, %v3391_v22  ;;  %v2558_v22 = vld [vmem:[%s4172_s2 + $0x50] sm:$0xff] }
 0x54d   :  { %2578 = vmatmul.mubr.msk.f32.gmra.mrb[52].mxu1 %vm409_vm2, %v2570_v14  ;;  %v1401_v14 = vld [vmem:[#allocation2 + $0x2e0] sm:$0xff] }
 0x54e   :  { %1245 = vmatprep.mubr.f32.mxu1 %v3248_v57 }
 0x551   :  { %2579 = vmatmul.mubr.msk.f32.gmra.mrb[54].mxu1 %vm409_vm2, %v2571_v15 }
 0x552   :  { %2790 = vmatprep.mubr.msk.f32.mxu1 %vm135_vm0, %v2556_v31 }
 0x553   :  { %2997 = vmatpush3.bf16.xpose.msk.msra.mxu1 %vm3314_vm1, %v3411_v27  ;;  %v2560_v27 = vld [vmem:[%s4172_s2 + $0x60] sm:$0xff] }
 0x554   :  { %3000 = vmatprep.subr.msk.bf16.mxu1 %vm3314_vm1, %v3413_v28  ;;  %v2561_v28 = vld [vmem:[%s4172_s2 + $0x68] sm:$0xff] }
 0x55b   :  { %3003 = vmatpush3.bf16.xpose.msk.msra.mxu1 %vm3314_vm1, %v3433_v33  ;;  %v2562_v33 = vld [vmem:[%s4172_s2 + $0x70] sm:$0xff] }
 0x55c   :  { %3006 = vmatprep.subr.msk.bf16.mxu1 %vm3314_vm1, %v3435_v34  ;;  %v2563_v34 = vld [vmem:[%s4172_s2 + $0x78] sm:$0xff] }
 0x563   :  { %3009 = vmatpush3.bf16.xpose.msk.msra.mxu1 %vm3314_vm1, %v3455_v39 }
 0x564   :  { %3012 = vmatprep.subr.msk.bf16.mxu1 %vm3314_vm1, %v3457_v40  ;;  %v1389_v40 = vld [vmem:[#allocation2 + $0x280] sm:$0xff] }
 0x56b   :  { %3015 = vmatpush3.bf16.xpose.msk.msra.mxu1 %vm3314_vm1, %v3477_v45 }
 0x56c   :  { %3018 = vmatprep.subr.msk.bf16.mxu1 %vm3314_vm1, %v3479_v46  ;;  %v1390_v46 = vld [vmem:[#allocation2 + $0x288] sm:$0xff] }
 0x573   :  { %3021 = vmatpush3.bf16.xpose.msk.msra.mxu1 %vm3314_vm1, %v3493_v49  ;;  %v1391_v49 = vld [vmem:[#allocation2 + $0x290] sm:$0xff] }
 0x57a   :  { %2791 = vmatmul.mubr.msk.f32.vlgmr.msra.gmra.mrb[40].mxu1 %vm135_vm0, %v2556_v31 }
 0x57b   :  { %2792 = vmatprep.mubr.msk.f32.mxu1 %vm135_vm0, %v2557_v21 }
 0x57e   :  { %2793 = vmatmul.mubr.msk.f32.gmra.mrb[42].mxu1 %vm135_vm0, %v2557_v21  ;;  %v1402_v21 = vld [vmem:[#allocation2 + $0x2e8] sm:$0xff] }
 0x57f   :  { %2794 = vmatprep.mubr.msk.f32.mxu1 %vm135_vm0, %v2558_v22 }
 0x582   :  { %2795 = vmatmul.mubr.msk.f32.gmra.mrb[44].mxu1 %vm135_vm0, %v2558_v22 }
 0x583   :  { %2796 = vmatprep.mubr.msk.f32.mxu1 %vm135_vm0, %v2559_v0 }
 0x586   :  { %2797 = vmatmul.mubr.msk.f32.gmra.mrb[46].mxu1 %vm135_vm0, %v2559_v0  ;;  %v1403_v0 = vld [vmem:[#allocation2 + $0x2f0] sm:$0xff] }
 0x587   :  { %2798 = vmatprep.mubr.msk.f32.mxu1 %vm135_vm0, %v2560_v27 }
 0x58a   :  { %2799 = vmatmul.mubr.msk.f32.gmra.mrb[48].mxu1 %vm135_vm0, %v2560_v27 }
 0x58b   :  { %2800 = vmatprep.mubr.msk.f32.mxu1 %vm135_vm0, %v2561_v28 }
 0x58e   :  { %2801 = vmatmul.mubr.msk.f32.gmra.mrb[50].mxu1 %vm135_vm0, %v2561_v28  ;;  %v1404_v28 = vld [vmem:[#allocation2 + $0x2f8] sm:$0xff] }
 0x58f   :  { %2802 = vmatprep.mubr.msk.f32.mxu1 %vm135_vm0, %v2562_v33 }
 0x592   :  { %2803 = vmatmul.mubr.msk.f32.gmra.mrb[52].mxu1 %vm135_vm0, %v2562_v33 }
 0x593   :  { %2804 = vmatprep.mubr.msk.f32.mxu1 %vm135_vm0, %v2563_v34 }
 0x596   :  { %2805 = vmatmul.mubr.msk.f32.gmra.mrb[54].mxu1 %vm135_vm0, %v2563_v34 }
 0x64d   :  { %v1342_v39 = vpop.f32.mrb[40].mxu1 }
 0x64e   :  { %v1344_v45 = vpop.f32.mrb[41].mxu1  ;;  %v1405_v32 = vadd.f32 %v1389_v40, %v1342_v39 }
 0x64f   :  { %v1406_v36 = vadd.f32 %v1390_v46, %v1344_v45 }
 0x650   :  { %v1421_v43 = vmax.f32 %v1405_v32, 0.0 }
 0x651   :  { %v1348_v37 = vpop.f32.mrb[42].mxu1  ;;  %v1422_v47 = vmax.f32 %v1406_v36, 0.0 }
 0x652   :  { %v1407_v38 = vadd.f32 %v1391_v49, %v1348_v37  ;;  %v1350_v41 = vpop.f32.mrb[43].mxu1 }
 0x653   :  { %v1408_v42 = vadd.f32 %v1392_v35, %v1350_v41  ;;  %v2621_v41 = vld [vmem:[%s4173_s3 + $0x148] sm:$0xff] }
 0x654   :  { %v1423_v44 = vmax.f32 %v1407_v38, 0.0  ;;  %v2620_v38 = vld [vmem:[%s4173_s3 + $0x140] sm:$0xff] }
 0x655   :  { %v1424_v48 = vmax.f32 %v1408_v42, 0.0  ;;  %v1354_v50 = vpop.f32.mrb[44].mxu1  ;;  %v2622_v42 = vld [vmem:[%s4173_s3 + $0x150] sm:$0xff] }
 0x656   :  { %v3024_v52 = vpack.c.bf16 %v1423_v44, %v1421_v43  ;;  %v1356_v53 = vpop.f32.mrb[45].mxu1  ;;  %v1409_v58 = vadd.f32 %v1393_v51, %v1354_v50  ;;  %v2623_v43 = vld [vmem:[%s4173_s3 + $0x158] sm:$0xff]  ;;  %v2624_v44 = vld [vmem:[%s4173_s3 + $0x160] sm:$0xff] }
 0x657   :  { %v3022_v55 = vpack.c.bf16 %v1424_v48, %v1422_v47  ;;  %v1410_v60 = vadd.f32 %v1394_v54, %v1356_v53  ;;  %v2625_v47 = vld [vmem:[%s4173_s3 + $0x168] sm:$0xff]  ;;  %v2626_v48 = vld [vmem:[%s4173_s3 + $0x170] sm:$0xff]  ;;  %v2627_v50 = vld [vmem:[%s4173_s3 + $0x178] sm:$0xff] }
 0x658   :  { %v1425_v2 = vmax.f32 %v1409_v58, 0.0  ;;  %v1446_v51 = vld [vmem:[#allocation2 + $0x300] sm:$0xff]  ;;  %v1447_v53 = vld [vmem:[#allocation2 + $0x308] sm:$0xff]  ;;  %v1449_v58 = vld [vmem:[#allocation2 + $0x318] sm:$0xff] }
 0x659   :  { %v1360_v61 = vpop.f32.mrb[46].mxu1  ;;  %3023 = vmatprep.subr.bf16.mxu0 %v3022_v55  ;;  %v1426_v5 = vmax.f32 %v1410_v60, 0.0  ;;  %v1448_v55 = vld [vmem:[#allocation2 + $0x310] sm:$0xff] }
 0x65a   :  { %v1411_v62 = vadd.f32 %v1395_v56, %v1360_v61  ;;  %v1362_v63 = vpop.f32.mrb[47].mxu1  ;;  %3025 = vmatpush1.bf16.msra.mxu0 %v3024_v52 }
 0x65b   :  { %v1412_v1 = vadd.f32 %v1396_v59, %v1362_v63 }
 0x65c   :  { %v1427_v3 = vmax.f32 %v1411_v62, 0.0 }
 0x65d   :  { %v1428_v6 = vmax.f32 %v1412_v1, 0.0  ;;  %v1366_v7 = vpop.f32.mrb[48].mxu1 }
 0x65e   :  { %v3028_v11 = vpack.c.bf16 %v1427_v3, %v1425_v2  ;;  %v1368_v12 = vpop.f32.mrb[49].mxu1  ;;  %v1413_v18 = vadd.f32 %v1397_v10, %v1366_v7 }
 0x65f   :  { %v3026_v16 = vpack.c.bf16 %v1428_v6, %v1426_v5  ;;  %v1414_v20 = vadd.f32 %v1398_v13, %v1368_v12  ;;  %v1450_v6 = vld [vmem:[#allocation2 + $0x320] sm:$0xff] }
 0x660   :  { %v1429_v29 = vmax.f32 %v1413_v18, 0.0  ;;  %v1453_v18 = vld [vmem:[#allocation2 + $0x338] sm:$0xff] }
 0x661   :  { %v1372_v23 = vpop.f32.mrb[50].mxu1  ;;  %3027 = vmatprep.subr.bf16.mxu0 %v3026_v16  ;;  %v1430_v4 = vmax.f32 %v1414_v20, 0.0  ;;  %v1452_v16 = vld [vmem:[#allocation2 + $0x330] sm:$0xff] }
 0x662   :  { %v1415_v24 = vadd.f32 %v1399_v17, %v1372_v23  ;;  %v1374_v25 = vpop.f32.mrb[51].mxu1  ;;  %3029 = vmatpush1.bf16.msra.mxu0 %v3028_v11  ;;  %v1451_v11 = vld [vmem:[#allocation2 + $0x328] sm:$0xff] }
 0x663   :  { %v1416_v26 = vadd.f32 %v1400_v19, %v1374_v25 }
 0x664   :  { %v1431_v30 = vmax.f32 %v1415_v24, 0.0 }
 0x665   :  { %v1432_v8 = vmax.f32 %v1416_v26, 0.0  ;;  %v1378_v9 = vpop.f32.mrb[52].mxu1 }
 0x666   :  { %v3032_v15 = vpack.c.bf16 %v1431_v30, %v1429_v29  ;;  %v1380_v31 = vpop.f32.mrb[53].mxu1  ;;  %v1417_v27 = vadd.f32 %v1401_v14, %v1378_v9 }
 0x667   :  { %v3030_v22 = vpack.c.bf16 %v1432_v8, %v1430_v4  ;;  %v1418_v33 = vadd.f32 %v1402_v21, %v1380_v31  ;;  %v1454_v8 = vld [vmem:[#allocation2 + $0x340] sm:$0xff] }
 0x668   :  { %v1433_v46 = vmax.f32 %v1417_v27, 0.0  ;;  %v1457_v27 = vld [vmem:[#allocation2 + $0x358] sm:$0xff] }
 0x669   :  { %v1384_v34 = vpop.f32.mrb[54].mxu1  ;;  %3031 = vmatprep.subr.bf16.mxu0 %v3030_v22  ;;  %v1434_v32 = vmax.f32 %v1418_v33, 0.0  ;;  %v1456_v22 = vld [vmem:[#allocation2 + $0x350] sm:$0xff] }
 0x66a   :  { %v1419_v39 = vadd.f32 %v1403_v0, %v1384_v34  ;;  %v1386_v40 = vpop.f32.mrb[55].mxu1  ;;  %3033 = vmatpush1.bf16.msra.mxu0 %v3032_v15  ;;  %v1455_v15 = vld [vmem:[#allocation2 + $0x348] sm:$0xff] }
 0x66b   :  { %v1420_v45 = vadd.f32 %v1404_v28, %v1386_v40 }
 0x66c   :  { %v1435_v49 = vmax.f32 %v1419_v39, 0.0 }
 0x66d   :  { %v1436_v35 = vmax.f32 %v1420_v45, 0.0 }
 0x66e   :  { %v3036_v36 = vpack.c.bf16 %v1435_v49, %v1433_v46 }
 0x66f   :  { %v3034_v37 = vpack.c.bf16 %v1436_v35, %v1434_v32  ;;  %v1458_v35 = vld [vmem:[#allocation2 + $0x360] sm:$0xff] }
 0x671   :  { %3035 = vmatprep.subr.bf16.mxu0 %v3034_v37 }
 0x672   :  { %3037 = vmatpush1.bf16.msra.mxu0 %v3036_v36 }
 0x675   :  { %2628 = vmatmul.mubr.msk.f32.vlgmr.msra.gmra.mrb[40].mxu0 %vm409_vm2, %v2620_v38  ;;  %v1459_v38 = vld [vmem:[#allocation2 + $0x368] sm:$0xff] }
 0x676   :  { %1556 = vmatprep.mubr.f32.mxu0 %v3248_v57 }
 0x679   :  { %2629 = vmatmul.mubr.msk.f32.gmra.mrb[42].mxu0 %vm409_vm2, %v2621_v41 }
 0x67a   :  { %1562 = vmatprep.mubr.f32.mxu0 %v3248_v57 }
 0x67d   :  { %2630 = vmatmul.mubr.msk.f32.gmra.mrb[44].mxu0 %vm409_vm2, %v2622_v42 }
 0x67e   :  { %1568 = vmatprep.mubr.f32.mxu0 %v3248_v57 }
 0x681   :  { %2631 = vmatmul.mubr.msk.f32.gmra.mrb[46].mxu0 %vm409_vm2, %v2623_v43  ;;  %v1460_v43 = vld [vmem:[#allocation2 + $0x370] sm:$0xff] }
 0x682   :  { %1574 = vmatprep.mubr.f32.mxu0 %v3248_v57 }
 0x685   :  { %2632 = vmatmul.mubr.msk.f32.gmra.mrb[48].mxu0 %vm409_vm2, %v2624_v44 }
 0x686   :  { %1580 = vmatprep.mubr.f32.mxu0 %v3248_v57 }
 0x689   :  { %2633 = vmatmul.mubr.msk.f32.gmra.mrb[50].mxu0 %vm409_vm2, %v2625_v47  ;;  %v1461_v47 = vld [vmem:[#allocation2 + $0x378] sm:$0xff] }
 0x68a   :  { %1586 = vmatprep.mubr.f32.mxu0 %v3248_v57 }
 0x68d   :  { %2634 = vmatmul.mubr.msk.f32.gmra.mrb[52].mxu0 %vm409_vm2, %v2626_v48 }
 0x68e   :  { %1592 = vmatprep.mubr.f32.mxu0 %v3248_v57 }
 0x691   :  { %2635 = vmatmul.mubr.msk.f32.gmra.mrb[54].mxu0 %vm409_vm2, %v2627_v50 }
 0x692   :  { %1728 = vmatprep.mubr.f32.mxu0 %v3248_v57 }
 0x748   :  { %v1552_v52 = vpop.f32.mrb[40].mxu0 }
 0x749   :  { %v1554_v54 = vpop.f32.mrb[41].mxu0  ;;  %v1553_v56 = vadd.f32 %v1552_v52, %v1446_v51 }
 0x74a   :  { %v1555_v59 = vadd.f32 %v1554_v54, %v1447_v53 }
 0x74b   :  { %v1599_v1 = vmax.f32 %v1553_v56, 0.0 }
 0x74c   :  { %v1558_v60 = vpop.f32.mrb[42].mxu0  ;;  %v1600_v3 = vmax.f32 %v1555_v59, 0.0 }
 0x74d   :  { %v1559_v61 = vadd.f32 %v1558_v60, %v1448_v55  ;;  %v1560_v62 = vpop.f32.mrb[43].mxu0 }
 0x74e   :  { %v1561_v63 = vadd.f32 %v1560_v62, %v1449_v58  ;;  %v2637_v62 = vld [vmem:[%s4173_s3 + $0x188] sm:$0xff] }
 0x74f   :  { %v1601_v2 = vmax.f32 %v1559_v61, 0.0  ;;  %v2636_v61 = vld [vmem:[%s4173_s3 + $0x180] sm:$0xff] }
 0x750   :  { %v1602_v5 = vmax.f32 %v1561_v63, 0.0  ;;  %v1564_v7 = vpop.f32.mrb[44].mxu0  ;;  %v2638_v63 = vld [vmem:[%s4173_s3 + $0x190] sm:$0xff] }
 0x751   :  { %v3040_v10 = vpack.c.bf16 %v1601_v2, %v1599_v1  ;;  %v1566_v12 = vpop.f32.mrb[45].mxu0  ;;  %v1565_v17 = vadd.f32 %v1564_v7, %v1450_v6  ;;  %v2639_v1 = vld [vmem:[%s4173_s3 + $0x198] sm:$0xff]  ;;  %v2640_v2 = vld [vmem:[%s4173_s3 + $0x1a0] sm:$0xff] }
 0x752   :  { %v3038_v13 = vpack.c.bf16 %v1602_v5, %v1600_v3  ;;  %v1567_v19 = vadd.f32 %v1566_v12, %v1451_v11  ;;  %v2641_v3 = vld [vmem:[%s4173_s3 + $0x1a8] sm:$0xff]  ;;  %v2642_v5 = vld [vmem:[%s4173_s3 + $0x1b0] sm:$0xff]  ;;  %v2643_v6 = vld [vmem:[%s4173_s3 + $0x1b8] sm:$0xff] }
 0x753   :  { %v1603_v26 = vmax.f32 %v1565_v17, 0.0  ;;  %v95_v7 = vld [vmem:[%s4171_s1 + $0x80] sm:$0xff]  ;;  %v97_v17 = vld [vmem:[%s4171_s1 + $0x90] sm:$0xff] }
 0x754   :  { %v1570_v20 = vpop.f32.mrb[46].mxu0  ;;  %3039 = vmatprep.subr.bf16.mxu0 %v3038_v13  ;;  %v1604_v30 = vmax.f32 %v1567_v19, 0.0  ;;  %v79_v11 = vld [vmem:[%s4171_s1] sm:$0xff]  ;;  %v98_v19 = vld [vmem:[%s4171_s1 + $0x98] sm:$0xff]  ;;  %v1961_v13 = vld [vmem:[%s4175_s5 + $0x10] sm:$0xff] }
 0x755   :  { %v1571_v23 = vadd.f32 %v1570_v20, %v1452_v16  ;;  %v1572_v24 = vpop.f32.mrb[47].mxu0  ;;  %3041 = vmatpush1.bf16.msra.mxu0 %v3040_v10  ;;  %v96_v10 = vld [vmem:[%s4171_s1 + $0x88] sm:$0xff]  ;;  %v3076_v20 = vpack.c.bf16 %v98_v19, %v97_v17 }
 0x756   :  { %v1573_v25 = vadd.f32 %v1572_v24, %v1453_v18  ;;  %v3070_v12 = vpack.c.bf16 %v96_v10, %v95_v7  ;;  %v80_v16 = vld [vmem:[%s4171_s1 + $0x8] sm:$0xff]  ;;  %v82_v24 = vld [vmem:[%s4171_s1 + $0x18] sm:$0xff] }
 0x757   :  { %v1605_v29 = vmax.f32 %v1571_v23, 0.0  ;;  %v3073_v18 = vpack.c.bf16 %v80_v16, %v79_v11  ;;  %v81_v23 = vld [vmem:[%s4171_s1 + $0x10] sm:$0xff]  ;;  %v1631_v16 = vld [vmem:[#allocation2 + $0x3b8] sm:$0xff] }
 0x758   :  { %v1606_v4 = vmax.f32 %v1573_v25, 0.0  ;;  %v1576_v9 = vpop.f32.mrb[48].mxu0  ;;  %3072 = vmatprep.subr.msk.bf16.mxu1 %vm3914_vm4, %v3070_v12  ;;  %v99_v25 = vld [vmem:[%s4171_s1 + $0xa0] sm:$0xff]  ;;  %v1630_v11 = vld [vmem:[#allocation2 + $0x3b0] sm:$0xff] }
 0x759   :  { %v3044_v14 = vpack.c.bf16 %v1605_v29, %v1603_v26  ;;  %v1578_v31 = vpop.f32.mrb[49].mxu0  ;;  %v1577_v0 = vadd.f32 %v1576_v9, %v1454_v8  ;;  %3075 = vmatpush3.bf16.xpose.msk.msra.mxu1 %vm3914_vm4, %v3073_v18  ;;  %v100_v26 = vld [vmem:[%s4171_s1 + $0xa8] sm:$0xff]  ;;  %v3079_v29 = vpack.c.bf16 %v82_v24, %v81_v23  ;;  %v101_v9 = vld [vmem:[%s4171_s1 + $0xb0] sm:$0xff] }
 0x75a   :  { %v3042_v21 = vpack.c.bf16 %v1606_v4, %v1604_v30  ;;  %v1579_v28 = vadd.f32 %v1578_v31, %v1455_v15  ;;  %3078 = vmatprep.subr.msk.bf16.mxu1 %vm3914_vm4, %v3076_v20  ;;  %v3082_v30 = vpack.c.bf16 %v100_v26, %v99_v25  ;;  %v83_v4 = vld [vmem:[%s4171_s1 + $0x20] sm:$0xff]  ;;  %v84_v8 = vld [vmem:[%s4171_s1 + $0x28] sm:$0xff] }
 0x75b   :  { %v1607_v45 = vmax.f32 %v1577_v0, 0.0  ;;  %v3085_v15 = vpack.c.bf16 %v84_v8, %v83_v4  ;;  %v103_v0 = vld [vmem:[%s4171_s1 + $0xc0] sm:$0xff] }
 0x75c   :  { %v1582_v33 = vpop.f32.mrb[50].mxu0  ;;  %3043 = vmatprep.subr.bf16.mxu0 %v3042_v21  ;;  %v1608_v49 = vmax.f32 %v1579_v28, 0.0  ;;  %v85_v21 = vld [vmem:[%s4171_s1 + $0x30] sm:$0xff] }
 0x75d   :  { %v1583_v34 = vadd.f32 %v1582_v33, %v1456_v22  ;;  %v1584_v39 = vpop.f32.mrb[51].mxu0  ;;  %3045 = vmatpush1.bf16.msra.mxu0 %v3044_v14  ;;  %v102_v14 = vld [vmem:[%s4171_s1 + $0xb8] sm:$0xff] }
 0x75e   :  { %v1585_v40 = vadd.f32 %v1584_v39, %v1457_v27  ;;  %v3088_v31 = vpack.c.bf16 %v102_v14, %v101_v9  ;;  %v86_v22 = vld [vmem:[%s4171_s1 + $0x38] sm:$0xff]  ;;  %v104_v27 = vld [vmem:[%s4171_s1 + $0xc8] sm:$0xff] }
 0x75f   :  { %v1609_v46 = vmax.f32 %v1583_v34, 0.0  ;;  %v3091_v28 = vpack.c.bf16 %v86_v22, %v85_v21  ;;  %v3094_v33 = vpack.c.bf16 %v104_v27, %v103_v0  ;;  %v87_v34 = vld [vmem:[%s4171_s1 + $0x40] sm:$0xff]  ;;  %v88_v39 = vld [vmem:[%s4171_s1 + $0x48] sm:$0xff]  ;;  %v1635_v22 = vld [vmem:[#allocation2 + $0x3d8] sm:$0xff] }
 0x760   :  { %v1610_v32 = vmax.f32 %v1585_v40, 0.0  ;;  %v1588_v36 = vpop.f32.mrb[52].mxu0  ;;  %v105_v40 = vld [vmem:[%s4171_s1 + $0xd0] sm:$0xff]  ;;  %v1633_v9 = vld [vmem:[#allocation2 + $0x3c8] sm:$0xff] }
 0x761   :  { %v3048_v37 = vpack.c.bf16 %v1609_v46, %v1607_v45  ;;  %v1590_v41 = vpop.f32.mrb[53].mxu0  ;;  %v1589_v44 = vadd.f32 %v1588_v36, %v1458_v35  ;;  %3081 = vmatpush3.bf16.xpose.msk.msra.mxu1 %vm3914_vm4, %v3079_v29  ;;  %v106_v45 = vld [vmem:[%s4171_s1 + $0xd8] sm:$0xff]  ;;  %v3097_v46 = vpack.c.bf16 %v88_v39, %v87_v34  ;;  %v107_v36 = vld [vmem:[%s4171_s1 + $0xe0] sm:$0xff] }
 0x762   :  { %v3046_v42 = vpack.c.bf16 %v1610_v32, %v1608_v49  ;;  %v1591_v48 = vadd.f32 %v1590_v41, %v1459_v38  ;;  %3084 = vmatprep.subr.msk.bf16.mxu1 %vm3914_vm4, %v3082_v30  ;;  %v3100_v49 = vpack.c.bf16 %v106_v45, %v105_v40  ;;  %v89_v32 = vld [vmem:[%s4171_s1 + $0x50] sm:$0xff]  ;;  %v90_v35 = vld [vmem:[%s4171_s1 + $0x58] sm:$0xff]  ;;  %v1632_v30 = vld [vmem:[#allocation2 + $0x3c0] sm:$0xff] }
 0x763   :  { %v1611_v54 = vmax.f32 %v1589_v44, 0.0  ;;  %v3103_v38 = vpack.c.bf16 %v90_v35, %v89_v32 }
 0x764   :  { %v1594_v50 = vpop.f32.mrb[54].mxu0  ;;  %3047 = vmatprep.subr.bf16.mxu0 %v3046_v42  ;;  %v1612_v56 = vmax.f32 %v1591_v48, 0.0  ;;  %v91_v42 = vld [vmem:[%s4171_s1 + $0x60] sm:$0xff] }
 0x765   :  { %v1595_v51 = vadd.f32 %v1594_v50, %v1460_v43  ;;  %v1596_v52 = vpop.f32.mrb[55].mxu0  ;;  %3049 = vmatpush1.bf16.msra.mxu0 %v3048_v37  ;;  %v108_v37 = vld [vmem:[%s4171_s1 + $0xe8] sm:$0xff] }
 0x766   :  { %v1597_v53 = vadd.f32 %v1596_v52, %v1461_v47  ;;  %v3106_v41 = vpack.c.bf16 %v108_v37, %v107_v36  ;;  %v92_v43 = vld [vmem:[%s4171_s1 + $0x68] sm:$0xff]  ;;  %v1624_v47 = vld [vmem:[#allocation2 + $0x380] sm:$0xff]  ;;  %v1626_v52 = vld [vmem:[#allocation2 + $0x390] sm:$0xff] }
 0x767   :  { %v1613_v55 = vmax.f32 %v1595_v51, 0.0  ;;  %v3109_v44 = vpack.c.bf16 %v92_v43, %v91_v42  ;;  %v1625_v50 = vld [vmem:[#allocation2 + $0x388] sm:$0xff]  ;;  %v1639_v43 = vld [vmem:[#allocation2 + $0x3f8] sm:$0xff] }
 0x768   :  { %v1614_v58 = vmax.f32 %v1597_v53, 0.0  ;;  %v1637_v36 = vld [vmem:[#allocation2 + $0x3e8] sm:$0xff] }
 0x769   :  { %v3052_v59 = vpack.c.bf16 %v1613_v55, %v1611_v54  ;;  %3087 = vmatpush3.bf16.xpose.msk.msra.mxu1 %vm3914_vm4, %v3085_v15  ;;  %v1627_v54 = vld [vmem:[#allocation2 + $0x398] sm:$0xff] }
 0x76a   :  { %v3050_v60 = vpack.c.bf16 %v1614_v58, %v1612_v56  ;;  %3090 = vmatprep.subr.msk.bf16.mxu1 %vm3914_vm4, %v3088_v31  ;;  %v1634_v31 = vld [vmem:[#allocation2 + $0x3d0] sm:$0xff] }
 0x76c   :  { %3051 = vmatprep.subr.bf16.mxu0 %v3050_v60 }
 0x76d   :  { %3053 = vmatpush1.bf16.msra.mxu0 %v3052_v59 }
 0x770   :  { %2644 = vmatmul.mubr.msk.f32.vlgmr.msra.gmra.mrb[56].mxu0 %vm409_vm2, %v2636_v61 }
 0x771   :  { %1734 = vmatprep.mubr.f32.mxu0 %v3248_v57  ;;  %3093 = vmatpush3.bf16.xpose.msk.msra.mxu1 %vm3914_vm4, %v3091_v28 }
 0x772   :  { %3096 = vmatprep.subr.msk.bf16.mxu1 %vm3914_vm4, %v3094_v33 }
 0x774   :  { %2645 = vmatmul.mubr.msk.f32.gmra.mrb[58].mxu0 %vm409_vm2, %v2637_v62 }
 0x775   :  { %1740 = vmatprep.mubr.f32.mxu0 %v3248_v57 }
 0x778   :  { %2646 = vmatmul.mubr.msk.f32.gmra.mrb[60].mxu0 %vm409_vm2, %v2638_v63 }
 0x779   :  { %1746 = vmatprep.mubr.f32.mxu0 %v3248_v57  ;;  %3099 = vmatpush3.bf16.xpose.msk.msra.mxu1 %vm3914_vm4, %v3097_v46 }
 0x77a   :  { %3102 = vmatprep.subr.msk.bf16.mxu1 %vm3914_vm4, %v3100_v49  ;;  %v1636_v49 = vld [vmem:[#allocation2 + $0x3e0] sm:$0xff] }
 0x77c   :  { %2647 = vmatmul.mubr.msk.f32.gmra.mrb[62].mxu0 %vm409_vm2, %v2639_v1 }
 0x77d   :  { %1752 = vmatprep.mubr.f32.mxu0 %v3248_v57 }
 0x780   :  { %2648 = vmatmul.mubr.msk.f32.gmra.mrb[64].mxu0 %vm409_vm2, %v2640_v2  ;;  %v1628_v2 = vld [vmem:[#allocation2 + $0x3a0] sm:$0xff] }
 0x781   :  { %1758 = vmatprep.mubr.f32.mxu0 %v3248_v57  ;;  %3105 = vmatpush3.bf16.xpose.msk.msra.mxu1 %vm3914_vm4, %v3103_v38 }
 0x782   :  { %3108 = vmatprep.subr.msk.bf16.mxu1 %vm3914_vm4, %v3106_v41  ;;  %v1638_v41 = vld [vmem:[#allocation2 + $0x3f0] sm:$0xff] }
 0x784   :  { %2649 = vmatmul.mubr.msk.f32.gmra.mrb[66].mxu0 %vm409_vm2, %v2641_v3 }
 0x785   :  { %1764 = vmatprep.mubr.f32.mxu0 %v3248_v57 }
 0x788   :  { %2650 = vmatmul.mubr.msk.f32.gmra.mrb[68].mxu0 %vm409_vm2, %v2642_v5 }
 0x789   :  { %1770 = vmatprep.mubr.f32.mxu0 %v3248_v57  ;;  %3111 = vmatpush3.bf16.xpose.msk.msra.mxu1 %vm3914_vm4, %v3109_v44 }
 0x78c   :  { %2651 = vmatmul.mubr.msk.f32.gmra.mrb[70].mxu0 %vm409_vm2, %v2643_v6  ;;  %v1629_v6 = vld [vmem:[#allocation2 + $0x3a8] sm:$0xff] }
 0x78d   :  { %1906 = vmatprep.mubr.f32.mxu0 %v3248_v57 }
 0x843   :  { %v1730_v48 = vpop.f32.mrb[56].mxu0 }
 0x844   :  { %v1732_v51 = vpop.f32.mrb[57].mxu0  ;;  %v1731_v53 = vadd.f32 %v1730_v48, %v1624_v47 }
 0x845   :  { %v1733_v55 = vadd.f32 %v1732_v51, %v1625_v50 }
 0x846   :  { %v1777_v61 = vmax.f32 %v1731_v53, 0.0 }
 0x847   :  { %v1736_v56 = vpop.f32.mrb[58].mxu0  ;;  %v1778_v63 = vmax.f32 %v1733_v55, 0.0 }
 0x848   :  { %v1737_v58 = vadd.f32 %v1736_v56, %v1626_v52  ;;  %v1738_v59 = vpop.f32.mrb[59].mxu0 }
 0x849   :  { %v1739_v60 = vadd.f32 %v1738_v59, %v1627_v54  ;;  %v2652_v59 = vld [vmem:[%s4173_s3 + $0x1c0] sm:$0xff] }
 0x84a   :  { %v1779_v62 = vmax.f32 %v1737_v58, 0.0 }
 0x84b   :  { %v1780_v1 = vmax.f32 %v1739_v60, 0.0  ;;  %v1742_v3 = vpop.f32.mrb[60].mxu0  ;;  %v2653_v60 = vld [vmem:[%s4173_s3 + $0x1c8] sm:$0xff] }
 0x84c   :  { %v4021_v5 = vpack.c.bf16 %v1779_v62, %v1777_v61  ;;  %v1744_v7 = vpop.f32.mrb[61].mxu0  ;;  %v1743_v12 = vadd.f32 %v1742_v3, %v1628_v2  ;;  %v2654_v61 = vld [vmem:[%s4173_s3 + $0x1d0] sm:$0xff]  ;;  %v2655_v62 = vld [vmem:[%s4173_s3 + $0x1d8] sm:$0xff] }
 0x84d   :  { %v4023_v10 = vpack.c.bf16 %v1780_v1, %v1778_v63  ;;  %v1745_v17 = vadd.f32 %v1744_v7, %v1629_v6  ;;  %v2656_v63 = vld [vmem:[%s4173_s3 + $0x1e0] sm:$0xff]  ;;  %v2657_v1 = vld [vmem:[%s4173_s3 + $0x1e8] sm:$0xff]  ;;  %v2658_v2 = vld [vmem:[%s4173_s3 + $0x1f0] sm:$0xff] }
 0x84e   :  { %v1781_v24 = vmax.f32 %v1743_v12, 0.0  ;;  %v2659_v3 = vld [vmem:[%s4173_s3 + $0x1f8] sm:$0xff]  ;;  %v109_v6 = vld [vmem:[%s4171_s1 + $0xf0] sm:$0xff] }
 0x84f   :  { %v1748_v18 = vpop.f32.mrb[62].mxu0  ;;  %3055 = vmatprep.subr.bf16.mxu0 %v4023_v10  ;;  %v1782_v26 = vmax.f32 %v1745_v17, 0.0  ;;  %v110_v7 = vld [vmem:[%s4171_s1 + $0xf8] sm:$0xff]  ;;  %v93_v12 = vld [vmem:[%s4171_s1 + $0x70] sm:$0xff] }
 0x850   :  { %v1749_v19 = vadd.f32 %v1748_v18, %v1630_v11  ;;  %v1750_v20 = vpop.f32.mrb[63].mxu0  ;;  %3057 = vmatpush1.bf16.msra.mxu0 %v4021_v5  ;;  %v3112_v11 = vpack.c.bf16 %v110_v7, %v109_v6  ;;  %v1959_v18 = vld [vmem:[%s4175_s5] sm:$0xff]  ;;  %v1816_v6 = vld [vmem:[#allocation2 + $0x470] sm:$0xff]  ;;  %v1815_v7 = vld [vmem:[#allocation2 + $0x468] sm:$0xff] }
 0x851   :  { %v1751_v23 = vadd.f32 %v1750_v20, %v1631_v16  ;;  %v94_v16 = vld [vmem:[%s4171_s1 + $0x78] sm:$0xff]  ;;  %2838 = vmatprep.mubr.msk.f32.mxu1 %vm1963_vm3, %v1959_v18 }
 0x852   :  { %v1783_v25 = vmax.f32 %v1749_v19, 0.0  ;;  %v3115_v17 = vpack.c.bf16 %v94_v16, %v93_v12  ;;  %3114 = vmatprep.subr.msk.bf16.mxu1 %vm3914_vm4, %v3112_v11  ;;  %v1960_v19 = vld [vmem:[%s4175_s5 + $0x8] sm:$0xff]  ;;  %v1962_v20 = vld [vmem:[%s4175_s5 + $0x18] sm:$0xff] }
 0x853   :  { %v1784_v29 = vmax.f32 %v1751_v23, 0.0  ;;  %v1754_v4 = vpop.f32.mrb[64].mxu0  ;;  %v1817_v11 = vld [vmem:[#allocation2 + $0x478] sm:$0xff] }
 0x854   :  { %v4027_v8 = vpack.c.bf16 %v1783_v25, %v1781_v24  ;;  %v1756_v14 = vpop.f32.mrb[65].mxu0  ;;  %v1755_v21 = vadd.f32 %v1754_v4, %v1632_v30  ;;  %3117 = vmatpush3.bf16.xpose.msk.msra.mxu1 %vm3914_vm4, %v3115_v17  ;;  %v1802_v25 = vld [vmem:[#allocation2 + $0x400] sm:$0xff]  ;;  %v1805_v30 = vld [vmem:[#allocation2 + $0x418] sm:$0xff] }
 0x855   :  { %v4029_v15 = vpack.c.bf16 %v1784_v29, %v1782_v26  ;;  %v1757_v0 = vadd.f32 %v1756_v14, %v1633_v9  ;;  %v1804_v26 = vld [vmem:[#allocation2 + $0x410] sm:$0xff]  ;;  %v1803_v29 = vld [vmem:[#allocation2 + $0x408] sm:$0xff] }
 0x856   :  { %v1785_v39 = vmax.f32 %v1755_v21, 0.0 }
 0x857   :  { %v1760_v27 = vpop.f32.mrb[66].mxu0  ;;  %3059 = vmatprep.subr.bf16.mxu0 %v4029_v15  ;;  %v1786_v45 = vmax.f32 %v1757_v0, 0.0 }
 0x858   :  { %v1761_v28 = vadd.f32 %v1760_v27, %v1634_v31  ;;  %v1762_v33 = vpop.f32.mrb[67].mxu0  ;;  %3061 = vmatpush1.bf16.msra.mxu0 %v4027_v8 }
 0x859   :  { %v1763_v34 = vadd.f32 %v1762_v33, %v1635_v22 }
 0x85a   :  { %v1787_v40 = vmax.f32 %v1761_v28, 0.0 }
 0x85b   :  { %v1788_v46 = vmax.f32 %v1763_v34, 0.0  ;;  %v1766_v32 = vpop.f32.mrb[68].mxu0  ;;  %2839 = vmatmul.mubr.msk.f32.vlgmr.msra.gmra.mrb[56].mxu1 %vm1963_vm3, %v1959_v18  ;;  %v1806_v34 = vld [vmem:[#allocation2 + $0x420] sm:$0xff] }
 0x85c   :  { %v4033_v35 = vpack.c.bf16 %v1787_v40, %v1785_v39  ;;  %v1768_v37 = vpop.f32.mrb[69].mxu0  ;;  %v1767_v42 = vadd.f32 %v1766_v32, %v1636_v49  ;;  %2840 = vmatprep.mubr.msk.f32.mxu1 %vm1963_vm3, %v1960_v19  ;;  %v1808_v39 = vld [vmem:[#allocation2 + $0x430] sm:$0xff]  ;;  %v1807_v40 = vld [vmem:[#allocation2 + $0x428] sm:$0xff] }
 0x85d   :  { %v4035_v38 = vpack.c.bf16 %v1788_v46, %v1786_v45  ;;  %v1769_v44 = vadd.f32 %v1768_v37, %v1637_v36  ;;  %v1809_v45 = vld [vmem:[#allocation2 + $0x438] sm:$0xff] }
 0x85e   :  { %v1789_v52 = vmax.f32 %v1767_v42, 0.0 }
 0x85f   :  { %v1772_v47 = vpop.f32.mrb[70].mxu0  ;;  %3063 = vmatprep.subr.bf16.mxu0 %v4035_v38  ;;  %v1790_v54 = vmax.f32 %v1769_v44, 0.0  ;;  %2841 = vmatmul.mubr.msk.f32.gmra.mrb[58].mxu1 %vm1963_vm3, %v1960_v19 }
 0x860   :  { %v1773_v48 = vadd.f32 %v1772_v47, %v1638_v41  ;;  %v1774_v50 = vpop.f32.mrb[71].mxu0  ;;  %3065 = vmatpush1.bf16.msra.mxu0 %v4033_v35  ;;  %2842 = vmatprep.mubr.msk.f32.mxu1 %vm1963_vm3, %v1961_v13 }
 0x861   :  { %v1775_v51 = vadd.f32 %v1774_v50, %v1639_v43  ;;  %v1812_v50 = vld [vmem:[#allocation2 + $0x450] sm:$0xff] }
 0x862   :  { %v1791_v53 = vmax.f32 %v1773_v48, 0.0  ;;  %v1810_v48 = vld [vmem:[#allocation2 + $0x440] sm:$0xff] }
 0x863   :  { %v1792_v55 = vmax.f32 %v1775_v51, 0.0  ;;  %2843 = vmatmul.mubr.msk.f32.gmra.mrb[60].mxu1 %vm1963_vm3, %v1961_v13  ;;  %v1811_v51 = vld [vmem:[#allocation2 + $0x448] sm:$0xff] }
 0x864   :  { %v4039_v56 = vpack.c.bf16 %v1791_v53, %v1789_v52  ;;  %2844 = vmatprep.mubr.msk.f32.mxu1 %vm1963_vm3, %v1962_v20  ;;  %v1813_v52 = vld [vmem:[#allocation2 + $0x458] sm:$0xff] }
 0x865   :  { %v4041_v58 = vpack.c.bf16 %v1792_v55, %v1790_v54 }
 0x867   :  { %3067 = vmatprep.subr.bf16.mxu0 %v4041_v58  ;;  %2845 = vmatmul.mubr.msk.f32.gmra.mrb[62].mxu1 %vm1963_vm3, %v1962_v20 }
 0x868   :  { %3069 = vmatpush1.bf16.msra.mxu0 %v4039_v56  ;;  %2237 = vmatprep.mubr.f32.mxu1 %v3248_v57 }
 0x86b   :  { %2660 = vmatmul.mubr.msk.f32.vlgmr.msra.gmra.mrb[72].mxu0 %vm409_vm2, %v2652_v59 }
 0x86c   :  { %1912 = vmatprep.mubr.f32.mxu0 %v3248_v57 }
 0x86f   :  { %2661 = vmatmul.mubr.msk.f32.gmra.mrb[74].mxu0 %vm409_vm2, %v2653_v60 }
 0x870   :  { %1918 = vmatprep.mubr.f32.mxu0 %v3248_v57 }
 0x873   :  { %2662 = vmatmul.mubr.msk.f32.gmra.mrb[76].mxu0 %vm409_vm2, %v2654_v61 }
 0x874   :  { %1924 = vmatprep.mubr.f32.mxu0 %v3248_v57 }
 0x877   :  { %2663 = vmatmul.mubr.msk.f32.gmra.mrb[78].mxu0 %vm409_vm2, %v2655_v62 }
 0x878   :  { %1930 = vmatprep.mubr.f32.mxu0 %v3248_v57 }
 0x87b   :  { %2664 = vmatmul.mubr.msk.f32.gmra.mrb[80].mxu0 %vm409_vm2, %v2656_v63 }
 0x87c   :  { %1936 = vmatprep.mubr.f32.mxu0 %v3248_v57 }
 0x87f   :  { %2665 = vmatmul.mubr.msk.f32.gmra.mrb[82].mxu0 %vm409_vm2, %v2657_v1 }
 0x880   :  { %1942 = vmatprep.mubr.f32.mxu0 %v3248_v57 }
 0x883   :  { %2666 = vmatmul.mubr.msk.f32.gmra.mrb[84].mxu0 %vm409_vm2, %v2658_v2 }
 0x884   :  { %1948 = vmatprep.mubr.f32.mxu0 %v3248_v57 }
 0x887   :  { %2667 = vmatmul.mubr.msk.f32.gmra.mrb[86].mxu0 %vm409_vm2, %v2659_v3  ;;  %v1814_v3 = vld [vmem:[#allocation2 + $0x460] sm:$0xff] }
 0x888   :  { %2355 = vmatprep.mubr.f32.mxu0 %v3248_v57 }
 0x93e   :  { %v1908_v23 = vpop.f32.mrb[72].mxu0 }
 0x93f   :  { %v1910_v24 = vpop.f32.mrb[73].mxu0  ;;  %v1909_v9 = vadd.f32 %v1908_v23, %v1802_v25  ;;  %v1956_v25 = vld [vmem:[%s4174_s4 + $0x8] sm:$0xff] }
 0x940   :  { %v1911_v21 = vadd.f32 %v1910_v24, %v1803_v29  ;;  %v1955_v24 = vld [vmem:[%s4174_s4] sm:$0xff]  ;;  %v1958_v29 = vld [vmem:[%s4174_s4 + $0x18] sm:$0xff] }
 0x942   :  { %v1914_v4 = vpop.f32.mrb[74].mxu0 }
 0x943   :  { %v1915_v14 = vadd.f32 %v1914_v4, %v1804_v26  ;;  %v1916_v31 = vpop.f32.mrb[75].mxu0  ;;  %v1957_v26 = vld [vmem:[%s4174_s4 + $0x10] sm:$0xff]  ;;  %v2262_v4 = vld [vmem:[#allocation2 + $0x480] sm:$0xff] }
 0x944   :  { %v1917_v22 = vadd.f32 %v1916_v31, %v1805_v30  ;;  %v2264_v31 = vld [vmem:[#allocation2 + $0x490] sm:$0xff] }
 0x945   :  { %v3120_v0 = vpack.c.bf16 %v1915_v14, %v1909_v9  ;;  %v2263_v14 = vld [vmem:[#allocation2 + $0x488] sm:$0xff] }
 0x946   :  { %v3118_v27 = vpack.c.bf16 %v1917_v22, %v1911_v21  ;;  %v1920_v28 = vpop.f32.mrb[76].mxu0  ;;  %v2265_v22 = vld [vmem:[#allocation2 + $0x498] sm:$0xff] }
 0x947   :  { %v1922_v33 = vpop.f32.mrb[77].mxu0  ;;  %v1921_v49 = vadd.f32 %v1920_v28, %v1806_v34 }
 0x948   :  { %3119 = vmatprep.subr.bf16.mxu1 %v3118_v27  ;;  %v1923_v37 = vadd.f32 %v1922_v33, %v1807_v40 }
 0x949   :  { %3121 = vmatpush1.bf16.msra.mxu1 %v3120_v0 }
 0x94a   :  { %v1926_v46 = vpop.f32.mrb[78].mxu0 }
 0x94b   :  { %v1927_v32 = vadd.f32 %v1926_v46, %v1808_v39  ;;  %v1928_v36 = vpop.f32.mrb[79].mxu0 }
 0x94c   :  { %v1929_v41 = vadd.f32 %v1928_v36, %v1809_v45 }
 0x94d   :  { %v3124_v42 = vpack.c.bf16 %v1927_v32, %v1921_v49  ;;  %v2266_v32 = vld [vmem:[#allocation2 + $0x4a0] sm:$0xff] }
 0x94e   :  { %v3122_v43 = vpack.c.bf16 %v1929_v41, %v1923_v37  ;;  %v1932_v44 = vpop.f32.mrb[80].mxu0  ;;  %v2267_v41 = vld [vmem:[#allocation2 + $0x4a8] sm:$0xff] }
 0x94f   :  { %v1934_v47 = vpop.f32.mrb[81].mxu0  ;;  %v1933_v54 = vadd.f32 %v1932_v44, %v1810_v48 }
 0x950   :  { %3123 = vmatprep.subr.bf16.mxu1 %v3122_v43  ;;  %v1935_v60 = vadd.f32 %v1934_v47, %v1811_v51  ;;  %v2268_v43 = vld [vmem:[#allocation2 + $0x4b0] sm:$0xff]  ;;  %v2269_v47 = vld [vmem:[#allocation2 + $0x4b8] sm:$0xff] }
 0x951   :  { %3125 = vmatpush1.bf16.msra.mxu1 %v3124_v42 }
 0x952   :  { %v1938_v53 = vpop.f32.mrb[82].mxu0 }
 0x953   :  { %v1939_v55 = vadd.f32 %v1938_v53, %v1812_v50  ;;  %v1940_v59 = vpop.f32.mrb[83].mxu0 }
 0x954   :  { %v1941_v61 = vadd.f32 %v1940_v59, %v1813_v52 }
 0x955   :  { %v3128_v62 = vpack.c.bf16 %v1939_v55, %v1933_v54 }
 0x956   :  { %v3126_v63 = vpack.c.bf16 %v1941_v61, %v1935_v60  ;;  %v1944_v1 = vpop.f32.mrb[84].mxu0 }
 0x957   :  { %v1946_v2 = vpop.f32.mrb[85].mxu0  ;;  %v1945_v16 = vadd.f32 %v1944_v1, %v1814_v3 }
 0x958   :  { %3127 = vmatprep.subr.bf16.mxu1 %v3126_v63  ;;  %v1947_v19 = vadd.f32 %v1946_v2, %v1815_v7  ;;  %v2287_v63 = vld [vmem:[%s4177_s7] sm:$0xf] }
 0x959   :  { %3129 = vmatpush1.bf16.msra.mxu1 %v3128_v62 }
 0x95a   :  { %v1950_v12 = vpop.f32.mrb[86].mxu0 }
 0x95b   :  { %v1951_v17 = vadd.f32 %v1950_v12, %v1816_v6  ;;  %v1952_v18 = vpop.f32.mrb[87].mxu0 }
 0x95c   :  { %v1953_v13 = vadd.f32 %v1952_v18, %v1817_v11 }
 0x95d   :  { %v3132_v20 = vpack.c.bf16 %v1951_v17, %v1945_v16 }
 0x95e   :  { %v3130_v23 = vpack.c.bf16 %v1953_v13, %v1947_v19 }
 0x960   :  { %3131 = vmatprep.subr.bf16.mxu1 %v3130_v23 }
 0x961   :  { %3133 = vmatpush1.bf16.msra.mxu1 %v3132_v20 }
 0x964   :  { %2704 = vmatmul.mubr.msk.f32.vlgmr.msra.gmra.mrb[56].mxu1 %vm409_vm2, %v1955_v24 }
 0x965   :  { %2243 = vmatprep.mubr.f32.mxu1 %v3248_v57 }
 0x968   :  { %2705 = vmatmul.mubr.msk.f32.gmra.mrb[58].mxu1 %vm409_vm2, %v1956_v25 }
 0x969   :  { %2249 = vmatprep.mubr.f32.mxu1 %v3248_v57 }
 0x96c   :  { %2706 = vmatmul.mubr.msk.f32.gmra.mrb[60].mxu1 %vm409_vm2, %v1957_v26 }
 0x96d   :  { %2255 = vmatprep.mubr.f32.mxu1 %v3248_v57 }
 0x970   :  { %2707 = vmatmul.mubr.msk.f32.gmra.mrb[62].mxu1 %vm409_vm2, %v1958_v29 }
 0xa37   :  { %v2239_v30 = vpop.f32.mrb[56].mxu1 }
 0xa38   :  { %v2241_v9 = vpop.f32.mrb[57].mxu1  ;;  %v2270_v21 = vadd.f32 %v2262_v4, %v2239_v30 }
 0xa39   :  { %v2271_v0 = vadd.f32 %v2263_v14, %v2241_v9 }
 0xa3a   :  { %v2278_v39 = vmax.f32 %v2270_v21, 0.0 }
 0xa3b   :  { %v2245_v27 = vpop.f32.mrb[58].mxu1  ;;  %v2279_v45 = vmax.f32 %v2271_v0, 0.0 }
 0xa3c   :  { %v2272_v28 = vadd.f32 %v2264_v31, %v2245_v27  ;;  %v2247_v33 = vpop.f32.mrb[59].mxu1 }
 0xa3d   :  { %v2273_v34 = vadd.f32 %v2265_v22, %v2247_v33 }
 0xa3e   :  { %v2280_v40 = vmax.f32 %v2272_v28, 0.0 }
 0xa3f   :  { %v2281_v46 = vmax.f32 %v2273_v34, 0.0  ;;  %v2251_v49 = vpop.f32.mrb[60].mxu1 }
 0xa40   :  { %v3136_v36 = vpack.c.bf16 %v2280_v40, %v2278_v39  ;;  %v2253_v37 = vpop.f32.mrb[61].mxu1  ;;  %v2274_v44 = vadd.f32 %v2266_v32, %v2251_v49 }
 0xa41   :  { %v3134_v42 = vpack.c.bf16 %v2281_v46, %v2279_v45  ;;  %v2275_v48 = vadd.f32 %v2267_v41, %v2253_v37 }
 0xa42   :  { %v2282_v54 = vmax.f32 %v2274_v44, 0.0 }
 0xa43   :  { %v2257_v50 = vpop.f32.mrb[62].mxu1  ;;  %3135 = vmatprep.subr.bf16.mxu0 %v3134_v42  ;;  %v2283_v59 = vmax.f32 %v2275_v48, 0.0 }
 0xa44   :  { %v2276_v51 = vadd.f32 %v2268_v43, %v2257_v50  ;;  %v2259_v52 = vpop.f32.mrb[63].mxu1  ;;  %3137 = vmatpush1.bf16.msra.mxu0 %v3136_v36 }
 0xa45   :  { %v2277_v53 = vadd.f32 %v2269_v47, %v2259_v52 }
 0xa46   :  { %v2284_v55 = vmax.f32 %v2276_v51, 0.0 }
 0xa47   :  { %v2285_v60 = vmax.f32 %v2277_v53, 0.0 }
 0xa48   :  { %v3140_v61 = vpack.c.bf16 %v2284_v55, %v2282_v54 }
 0xa49   :  { %v3138_v62 = vpack.c.bf16 %v2285_v60, %v2283_v59 }
 0xa4b   :  { %3139 = vmatprep.subr.bf16.mxu0 %v3138_v62 }
 0xa4c   :  { %3141 = vmatpush1.bf16.msra.mxu0 %v3140_v61 }
 0xa4d   :  { %3143 = vmatprep.subr.bf16.mxu0 %v4023_v10  ;;  %v2286_v10 = vld [vmem:[%s4176_s6] sm:$0xf] }
 0xa4f   :  { %2708 = vmatmul.mubr.msk.f32.vlgmr.msra.gmra.mrb[88].mxu0 %vm135_vm0, %v2287_v63 }
 0xa50   :  { %3145 = vmatpush1.bf16.msra.mxu0 %v4021_v5  ;;  %2429 = vmatprep.mubr.f32.mxu0 %v3248_v57  ;;  %v2436_v5 = vld [vmem:[#allocation2 + $0x4c0] sm:$0xf]  ;;  %v2437_v57 = vld [vmem:[#allocation2 + $0x4c8] sm:$0xf] }
 0xa51   :  { %3147 = vmatprep.subr.bf16.mxu0 %v4029_v15 }
 0xa54   :  { %3149 = vmatpush1.bf16.msra.mxu0 %v4027_v8 }
 0xa55   :  { %3151 = vmatprep.subr.bf16.mxu0 %v4035_v38 }
 0xa58   :  { %3153 = vmatpush1.bf16.msra.mxu0 %v4033_v35 }
 0xa59   :  { %3155 = vmatprep.subr.bf16.mxu0 %v4041_v58 }
 0xa5c   :  { %3157 = vmatpush1.bf16.msra.mxu0 %v4039_v56 }
 0xa5f   :  { %2709 = vmatmul.mubr.msk.f32.vlgmr.msra.gmra.mrb[88].mxu0 %vm409_vm2, %v2286_v10 }
 0xb32   :  { %v2431_v1 = vpop.f32.mrb[88].mxu0 }
 0xb33   :  { %v2438_v15 = vadd.f32 %v2436_v5, %v2431_v1  ;;  %v2433_v2 = vpop.f32.mrb[89].mxu0 }
 0xb34   :  { %v2439_v8 = vadd.f32 %v2437_v57, %v2433_v2 }
 0xb36   :  { %v2442_v38 = vcombine.low %v2438_v15, %v2439_v8 }
 0xb38   :  { %2444 = vst [vmem:[#allocation5] sm:$0xff] %v2442_v38 }
 0xb39   :  { %3230 = shalt.err (!%p3227_p12)
}
 0xb3a   :  { %s3231_s27 = scalar_lea.hbm %s4179_s9, 128 }
 0xb3b   :  { %p3232_p13 = scmp.ne.s32.totalorder %s4179_s9, %s3231_s27  ;;  %p3235_p0 = scmp.lt.u32.totalorder %s3231_s27, %s4179_s9 }
 0xb3d   :  { %p3237_p1 = pnand %p3235_p0, %p3232_p13 }
 0xb3f   :  { %3240 = shalt.err (!%p3237_p1)
}
 0xb40   :  { %2454 = dma.vmem_to_hbm [thread:$0]  %s2452_s25, 128, %s4179_s9, [#allocation4]  }
 0xb41   :  { %3243 = dma.done.wait [#allocation4], 128  }
 0xb42   :  { %3244 = vsyncadd [#allocation4], 4294967168 }
 0xb43   :  { %2458 = vsyncpa [#allocation3], 1 }
 0xb44   :  { %2459 = vsyncpa [#allocation4], 1 }

</bundles_post_ra>
